<compile_context>
chip_gen: v5e
topology: v5e:2x2
jax: 0.10.0
libtpu: 0.0.40
codegen_flags: <defaults>
</compile_context>

<pallas_src>
import functools

import jax
import jax.numpy as jnp
import numpy as np
from jax.experimental import pallas as pl
from jax.experimental.pallas import tpu as pltpu

IN_FEATURES = 28 * 28  # 784


def _round_up(n, m):
    return ((n + m - 1) // m) * m


def _pad_to(a, shape):
    pads = [(0, s - d) for d, s in zip(a.shape, shape)]
    return jnp.pad(a, pads)


def mlp_kernel(x_ref, w1_ref, b1_ref, w2_ref, b2_ref, w3_ref, b3_ref, o_ref,
               *, out_class):
    # Layer 1: Linear(784->d1) + Sigmoid. bf16 MXU inputs, f32 accumulate,
    # f32 elementwise (v5e has no bf16 VPU/EUP).
    h1 = jnp.dot(x_ref[...], w1_ref[...], preferred_element_type=jnp.float32)
    h1 = jax.nn.sigmoid(h1 + b1_ref[...])

    # Layer 2: Linear(d1->d2) + Sigmoid. Cast only the dot operand to bf16.
    h2 = jnp.dot(h1.astype(jnp.bfloat16), w2_ref[...],
                 preferred_element_type=jnp.float32)
    h2 = jax.nn.sigmoid(h2 + b2_ref[...])

    # Layer 3: Linear(d2->out) + Softmax(dim=1).
    logits = jnp.dot(h2.astype(jnp.bfloat16), w3_ref[...],
                     preferred_element_type=jnp.float32)
    logits = logits + b3_ref[...]

    # The lane dim is zero-padded out to 128; mask padded columns so they do
    # not contribute exp(...) to the softmax denominator.
    col = jax.lax.broadcasted_iota(jnp.int32, logits.shape, 1)
    valid = col < out_class
    logits = jnp.where(valid, logits, -1e30)

    m = jnp.max(logits, axis=1, keepdims=True)
    e = jnp.exp(logits - m)
    e = jnp.where(valid, e, 0.0)
    denom = jnp.sum(e, axis=1, keepdims=True)
    # Exact f32 divide: keeps each softmax row summing to 1 (the approx EUP
    # reciprocal previously broke the 1e-3 row-sum tolerance).
    o_ref[...] = e / denom


def neural_network_forward(x, params, *, tb_max=1024):
    """x: [B, 1, 28, 28] (or anything reshapeable to [B, 784])."""
    w1, b1, w2, b2, w3, b3 = params
    B = x.shape[0]
    x2d = x.reshape(B, IN_FEATURES).astype(jnp.float32)  # == torch .view(-1, 784)

    d1, d2, oc = w1.shape[1], w2.shape[1], w3.shape[1]
    k_pad = _round_up(IN_FEATURES, 128)   # 896
    d1_pad = _round_up(d1, 128)
    d2_pad = _round_up(d2, 128)
    out_pad = _round_up(oc, 128)

    # Batch tile: large enough to hide per-step overhead, small enough that
    # double-buffered x tiles + weights fit v7x's 32 MiB scoped VMEM.
    tb = min(tb_max, _round_up(B, 128))
    b_pad = _round_up(B, tb)

    # Lane-dense, zero-padded operands. Zero-padded W rows/cols are exact:
    # padded h columns become sigmoid(0)=0.5 but multiply zero weight rows.
    xp = _pad_to(x2d, (b_pad, k_pad)).astype(jnp.bfloat16)
    w1p = _pad_to(w1.astype(jnp.float32), (k_pad, d1_pad)).astype(jnp.bfloat16)
    w2p = _pad_to(w2.astype(jnp.float32), (d1_pad, d2_pad)).astype(jnp.bfloat16)
    w3p = _pad_to(w3.astype(jnp.float32), (d2_pad, out_pad)).astype(jnp.bfloat16)
    b1p = _pad_to(b1.reshape(1, -1).astype(jnp.float32), (1, d1_pad))
    b2p = _pad_to(b2.reshape(1, -1).astype(jnp.float32), (1, d2_pad))
    b3p = _pad_to(b3.reshape(1, -1).astype(jnp.float32), (1, out_pad))

    grid = (b_pad // tb,)
    kernel = functools.partial(mlp_kernel, out_class=oc)

    out_padded = pl.pallas_call(
        kernel,
        out_shape=jax.ShapeDtypeStruct((b_pad, out_pad), jnp.float32),
        grid=grid,
        in_specs=[
            pl.BlockSpec((tb, k_pad), lambda i: (i, 0)),        # x: tiled over B
            pl.BlockSpec((k_pad, d1_pad), lambda i: (0, 0)),    # weights/biases:
            pl.BlockSpec((1, d1_pad), lambda i: (0, 0)),        # constant block ->
            pl.BlockSpec((d1_pad, d2_pad), lambda i: (0, 0)),   # fetched once,
            pl.BlockSpec((1, d2_pad), lambda i: (0, 0)),        # VMEM-resident
            pl.BlockSpec((d2_pad, out_pad), lambda i: (0, 0)),
            pl.BlockSpec((1, out_pad), lambda i: (0, 0)),
        ],
        out_specs=pl.BlockSpec((tb, out_pad), lambda i: (i, 0)),
        compiler_params=pltpu.CompilerParams(
            dimension_semantics=("parallel",)),
    )(xp, w1p, b1p, w2p, b2p, w3p, b3p)

    return out_padded[:B, :oc]


def init_params(key, d1, d2, out_class=10):
    """Deterministic init mimicking torch.nn.Linear default (U(-1/sqrt(fan_in), +))."""
    def linear(k, fan_in, fan_out):
        kw, kb = jax.random.split(k)
        bound = 1.0 / np.sqrt(fan_in)
        w = jax.random.uniform(kw, (fan_in, fan_out), jnp.float32, -bound, bound)
        b = jax.random.uniform(kb, (1, fan_out), jnp.float32, -bound, bound)
        return w, b

    k1, k2, k3 = jax.random.split(key, 3)
    w1, b1 = linear(k1, IN_FEATURES, d1)
    w2, b2 = linear(k2, d1, d2)
    w3, b3 = linear(k3, d2, out_class)
    return (w1, b1, w2, b2, w3, b3)


def reference_forward(x, params):
    """Pure-JAX f32 reference matching the PyTorch module exactly."""
    w1, b1, w2, b2, w3, b3 = params
    h = x.reshape(x.shape[0], IN_FEATURES).astype(jnp.float32)
    h = jax.nn.sigmoid(h @ w1 + b1)
    h = jax.nn.sigmoid(h @ w2 + b2)
    return jax.nn.softmax(h @ w3 + b3, axis=1)


if __name__ == "__main__":
    key = jax.random.PRNGKey(0)
    k_x, k_p = jax.random.split(key)

    B, d1, d2, out_class = 8, 64, 32, 10
    x = jax.random.normal(k_x, (B, 1, 28, 28), jnp.float32)
    params = init_params(k_p, d1, d2, out_class)

    out = jax.block_until_ready(neural_network_forward(x, params))
    ref = jax.block_until_ready(reference_forward(x, params))

    assert out.shape == (B, out_class)
    # bf16 matmul operands -> loosened tolerance vs the f32 reference
    # (probabilities are bounded by 1).
    np.testing.assert_allclose(np.asarray(out), np.asarray(ref),
                               rtol=0.0, atol=2e-2)
    # Softmax rows must sum to ~1 (exact f32 divide in the kernel).
    np.testing.assert_allclose(np.asarray(out).sum(axis=1),
                               np.ones(B), rtol=0.0, atol=1e-3)

    print("KERNEL_OK")
</pallas_src>

<mosaic_0001>
module attributes {stable_mosaic.version = 11 : i64} {
  func.func @mlp_kernel(%arg0: i32, %arg1: memref<128x896xbf16, #tpu.memory_space<vmem>>, %arg2: memref<896x128xbf16, #tpu.memory_space<vmem>>, %arg3: memref<1x128xf32, #tpu.memory_space<vmem>>, %arg4: memref<128x128xbf16, #tpu.memory_space<vmem>>, %arg5: memref<1x128xf32, #tpu.memory_space<vmem>>, %arg6: memref<128x128xbf16, #tpu.memory_space<vmem>>, %arg7: memref<1x128xf32, #tpu.memory_space<vmem>>, %arg8: memref<128x128xf32, #tpu.memory_space<vmem>>) attributes {dimension_semantics = [#tpu.dimension_semantics<parallel>], iteration_bounds = array<i64: 1>, scalar_prefetch = 0 : i64, scratch_operands = 0 : i64, tpu.core_type = #tpu.core_type<tc>, window_params = [{transform_indices = @transform_0, window_bounds = array<i64: 128, 896>}, {pipeline_mode = #tpu.pipeline_mode<synchronous>, transform_indices = @transform_1, window_bounds = array<i64: 896, 128>}, {pipeline_mode = #tpu.pipeline_mode<synchronous>, transform_indices = @transform_2, window_bounds = array<i64: 1, 128>}, {pipeline_mode = #tpu.pipeline_mode<synchronous>, transform_indices = @transform_3, window_bounds = array<i64: 128, 128>}, {pipeline_mode = #tpu.pipeline_mode<synchronous>, transform_indices = @transform_4, window_bounds = array<i64: 1, 128>}, {pipeline_mode = #tpu.pipeline_mode<synchronous>, transform_indices = @transform_5, window_bounds = array<i64: 128, 128>}, {pipeline_mode = #tpu.pipeline_mode<synchronous>, transform_indices = @transform_6, window_bounds = array<i64: 1, 128>}, {transform_indices = @transform_7, window_bounds = array<i64: 128, 128>}]} {
    %c0 = arith.constant 0 : index
    %c0_0 = arith.constant 0 : index
    %0 = vector.load %arg1[%c0, %c0_0] : memref<128x896xbf16, #tpu.memory_space<vmem>>, vector<128x896xbf16>
    %c0_1 = arith.constant 0 : index
    %c0_2 = arith.constant 0 : index
    %1 = vector.load %arg2[%c0_1, %c0_2] : memref<896x128xbf16, #tpu.memory_space<vmem>>, vector<896x128xbf16>
    %cst = arith.constant dense<0.000000e+00> : vector<128x128xf32>
    %2 = tpu.matmul %0, %1, %cst {dimension_numbers = #tpu.dot_dimension_numbers<[1], [0], [0], [1], [0, 0, 1, 1], [], []>} : vector<128x896xbf16>, vector<896x128xbf16>, vector<128x128xf32> -> vector<128x128xf32>
    %c0_3 = arith.constant 0 : index
    %c0_4 = arith.constant 0 : index
    %3 = vector.load %arg3[%c0_3, %c0_4] : memref<1x128xf32, #tpu.memory_space<vmem>>, vector<1x128xf32>
    %4 = vector.broadcast %3 : vector<1x128xf32> to vector<128x128xf32>
    %5 = arith.addf %2, %4 : vector<128x128xf32>
    %6 = arith.negf %5 : vector<128x128xf32>
    %7 = math.exp %6 : vector<128x128xf32>
    %cst_5 = arith.constant 1.000000e+00 : f32
    %8 = vector.broadcast %cst_5 : f32 to vector<128x128xf32>
    %9 = arith.addf %8, %7 : vector<128x128xf32>
    %10 = arith.divf %8, %9 : vector<128x128xf32>
    %11 = arith.truncf %10 : vector<128x128xf32> to vector<128x128xbf16>
    %c0_6 = arith.constant 0 : index
    %c0_7 = arith.constant 0 : index
    %12 = vector.load %arg4[%c0_6, %c0_7] : memref<128x128xbf16, #tpu.memory_space<vmem>>, vector<128x128xbf16>
    %cst_8 = arith.constant dense<0.000000e+00> : vector<128x128xf32>
    %13 = tpu.matmul %11, %12, %cst_8 {dimension_numbers = #tpu.dot_dimension_numbers<[1], [0], [0], [1], [0, 0, 1, 1], [], []>} : vector<128x128xbf16>, vector<128x128xbf16>, vector<128x128xf32> -> vector<128x128xf32>
    %c0_9 = arith.constant 0 : index
    %c0_10 = arith.constant 0 : index
    %14 = vector.load %arg5[%c0_9, %c0_10] : memref<1x128xf32, #tpu.memory_space<vmem>>, vector<1x128xf32>
    %15 = vector.broadcast %14 : vector<1x128xf32> to vector<128x128xf32>
    %16 = arith.addf %13, %15 : vector<128x128xf32>
    %17 = arith.negf %16 : vector<128x128xf32>
    %18 = math.exp %17 : vector<128x128xf32>
    %cst_11 = arith.constant 1.000000e+00 : f32
    %19 = vector.broadcast %cst_11 : f32 to vector<128x128xf32>
    %20 = arith.addf %19, %18 : vector<128x128xf32>
    %21 = arith.divf %19, %20 : vector<128x128xf32>
    %22 = arith.truncf %21 : vector<128x128xf32> to vector<128x128xbf16>
    %c0_12 = arith.constant 0 : index
    %c0_13 = arith.constant 0 : index
    %23 = vector.load %arg6[%c0_12, %c0_13] : memref<128x128xbf16, #tpu.memory_space<vmem>>, vector<128x128xbf16>
    %cst_14 = arith.constant dense<0.000000e+00> : vector<128x128xf32>
    %24 = tpu.matmul %22, %23, %cst_14 {dimension_numbers = #tpu.dot_dimension_numbers<[1], [0], [0], [1], [0, 0, 1, 1], [], []>} : vector<128x128xbf16>, vector<128x128xbf16>, vector<128x128xf32> -> vector<128x128xf32>
    %c0_15 = arith.constant 0 : index
    %c0_16 = arith.constant 0 : index
    %25 = vector.load %arg7[%c0_15, %c0_16] : memref<1x128xf32, #tpu.memory_space<vmem>>, vector<1x128xf32>
    %26 = vector.broadcast %25 : vector<1x128xf32> to vector<128x128xf32>
    %27 = arith.addf %24, %26 : vector<128x128xf32>
    %28 = tpu.iota {dimensions = array<i32: 1>} : vector<128x128xi32>
    %c10_i32 = arith.constant 10 : i32
    %29 = vector.broadcast %c10_i32 : i32 to vector<128x128xi32>
    %30 = arith.cmpi slt, %28, %29 : vector<128x128xi32>
    %cst_17 = arith.constant -1.000000e+30 : f32
    %31 = vector.broadcast %cst_17 : f32 to vector<128x128xf32>
    %32 = arith.select %30, %27, %31 : vector<128x128xi1>, vector<128x128xf32>
    %cst_18 = arith.constant dense<0xFF800000> : vector<128xf32>
    %33 = vector.multi_reduction <maximumf>, %32, %cst_18 [1] : vector<128x128xf32> to vector<128xf32>
    %34 = vector.shape_cast %33 : vector<128xf32> to vector<128x1xf32>
    %35 = vector.broadcast %34 : vector<128x1xf32> to vector<128x128xf32>
    %36 = arith.subf %32, %35 : vector<128x128xf32>
    %37 = math.exp %36 : vector<128x128xf32>
    %cst_19 = arith.constant 0.000000e+00 : f32
    %38 = vector.broadcast %cst_19 : f32 to vector<128x128xf32>
    %39 = arith.select %30, %37, %38 : vector<128x128xi1>, vector<128x128xf32>
    %cst_20 = arith.constant dense<0.000000e+00> : vector<128xf32>
    %40 = vector.multi_reduction <add>, %39, %cst_20 [1] : vector<128x128xf32> to vector<128xf32>
    %41 = vector.shape_cast %40 : vector<128xf32> to vector<128x1xf32>
    %42 = vector.broadcast %41 : vector<128x1xf32> to vector<128x128xf32>
    %43 = arith.divf %39, %42 : vector<128x128xf32>
    %c0_21 = arith.constant 0 : index
    %c0_22 = arith.constant 0 : index
    %44 = vector.load %arg8[%c0_21, %c0_22] : memref<128x128xf32, #tpu.memory_space<vmem>>, vector<128x128xf32>
    tpu.vector_store %arg8[%c0_21, %c0_22], %43 {strides = array<i32>} : memref<128x128xf32, #tpu.memory_space<vmem>>, vector<128x128xf32>,
    return
  }
  func.func @transform_0(%arg0: i32) -> (i32, i32) {
    %c0_i32 = arith.constant 0 : i32
    %c0_i32_0 = arith.constant 0 : i32
    return %arg0, %c0_i32 : i32, i32
  }
  func.func @transform_1(%arg0: i32) -> (i32, i32) {
    %c0_i32 = arith.constant 0 : i32
    %c0_i32_0 = arith.constant 0 : i32
    %c0_i32_1 = arith.constant 0 : i32
    return %c0_i32, %c0_i32_0 : i32, i32
  }
  func.func @transform_2(%arg0: i32) -> (i32, i32) {
    %c0_i32 = arith.constant 0 : i32
    %c0_i32_0 = arith.constant 0 : i32
    %c0_i32_1 = arith.constant 0 : i32
    return %c0_i32, %c0_i32_0 : i32, i32
  }
  func.func @transform_3(%arg0: i32) -> (i32, i32) {
    %c0_i32 = arith.constant 0 : i32
    %c0_i32_0 = arith.constant 0 : i32
    %c0_i32_1 = arith.constant 0 : i32
    return %c0_i32, %c0_i32_0 : i32, i32
  }
  func.func @transform_4(%arg0: i32) -> (i32, i32) {
    %c0_i32 = arith.constant 0 : i32
    %c0_i32_0 = arith.constant 0 : i32
    %c0_i32_1 = arith.constant 0 : i32
    return %c0_i32, %c0_i32_0 : i32, i32
  }
  func.func @transform_5(%arg0: i32) -> (i32, i32) {
    %c0_i32 = arith.constant 0 : i32
    %c0_i32_0 = arith.constant 0 : i32
    %c0_i32_1 = arith.constant 0 : i32
    return %c0_i32, %c0_i32_0 : i32, i32
  }
  func.func @transform_6(%arg0: i32) -> (i32, i32) {
    %c0_i32 = arith.constant 0 : i32
    %c0_i32_0 = arith.constant 0 : i32
    %c0_i32_1 = arith.constant 0 : i32
    return %c0_i32, %c0_i32_0 : i32, i32
  }
  func.func @transform_7(%arg0: i32) -> (i32, i32) {
    %c0_i32 = arith.constant 0 : i32
    %c0_i32_0 = arith.constant 0 : i32
    return %arg0, %c0_i32 : i32, i32
  }
}

</mosaic_0001>

<bundles_post_ra>
// kernel: tpu_custom_call.1
= control target key start
LH: loop header
LB: loop body
LE: loop exit
PB: predicated region body
PF: predicated region fallthrough
CT: control target
= control target key end

     0   :  { %12 = vsyncpa [#allocation3], 0  ;;  %s4209_s0 = inlined_call_operand.hbm [shape: bf16[128,896], index: 0, kind: input, shape index: {}]   ;;  %s4210_s1 = inlined_call_operand.hbm [shape: bf16[896,128], index: 1, kind: input, shape index: {}]   ;;  %s4211_s2 = inlined_call_operand.vmem [shape: f32[1,128], index: 2, kind: input, shape index: {}]   ;;  %s4212_s3 = inlined_call_operand.hbm [shape: bf16[128,128], index: 3, kind: input, shape index: {}]   ;;  %s4213_s4 = inlined_call_operand.vmem [shape: f32[1,128], index: 4, kind: input, shape index: {}]   ;;  %s4214_s5 = inlined_call_operand.hbm [shape: bf16[128,128], index: 5, kind: input, shape index: {}]   ;;  %s4215_s6 = inlined_call_operand.vmem [shape: f32[1,128], index: 6, kind: input, shape index: {}]   ;;  %s4216_s7 = inlined_call_operand.hbm [shape: f32[128,128], index: 7, kind: output, shape index: {}]  }
   0x1   :  { %13 = vsyncpa [#allocation6], 0 }
   0x2   :  { %14 = vsyncpa [#allocation9], 0  ;;  %s33_s26 = sshll.u32 %s4210_s1, 4  ;;  %s34_s26 = int_to_ptr.hbm [resolvable:$true] %s33_s26 }
   0x3   :  { %15 = vsyncpa [#allocation4], 0  ;;  %s3549_s27 = smov [#allocation5]   ;;  %s20_s8 = sshll.u32 %s4209_s0, 4  ;;  %s21_s8 = int_to_ptr.hbm [resolvable:$true] %s20_s8 }
   0x4   :  { %s35_s28 = sshll.u32 %s3549_s27, 4  ;;  %s3550_s9 = smov 64   ;;  %s36_s28 = int_to_ptr.vmem [resolvable:$true] %s35_s28 }
   0x5   :  { %s3551_s10 = smov 4   ;;  %s3552_s11 = smov [#allocation2]  }
   0x6   :  { %41 = dma.hbm_to_vmem [thread:$0]  %s34_s26, 7168, %s36_s28, [#allocation6], %s3550_s9, %s3550_s9, %s3551_s10  }
   0x7   :  { %s22_s12 = sshll.u32 %s3552_s11, 4  ;;  %s3553_s13 = smov 448   ;;  %s23_s12 = int_to_ptr.vmem [resolvable:$true] %s22_s12 }
   0x8   :  { %s3554_s14 = smov 28   ;;  %s48_s16 = sshll.u32 %s4212_s3, 4  ;;  %s49_s16 = int_to_ptr.hbm [resolvable:$true] %s48_s16 }
   0x9   :  { %28 = dma.hbm_to_vmem [thread:$0]  %s21_s8, 7168, %s23_s12, [#allocation3], %s3553_s13, %s3553_s13, %s3554_s14  }
   0xa   :  { %s3555_s17 = smov [#allocation7]   ;;  %s63_s20 = sshll.u32 %s4214_s5, 4  ;;  %s64_s20 = int_to_ptr.hbm [resolvable:$true] %s63_s20 }
   0xb   :  { %s50_s18 = sshll.u32 %s3555_s17, 4  ;;  %s3556_s21 = smov [#allocation8]   ;;  %s51_s18 = int_to_ptr.vmem [resolvable:$true] %s50_s18 }
   0xc   :  { %56 = dma.hbm_to_vmem [thread:$0]  %s49_s16, 1024, %s51_s18, [#allocation6], %s3550_s9, %s3550_s9, %s3551_s10  }
   0xd   :  { %s65_s22 = sshll.u32 %s3556_s21, 4  ;;  %s66_s22 = int_to_ptr.vmem [resolvable:$true] %s65_s22 }
   0xe   :  { %71 = dma.hbm_to_vmem [thread:$0]  %s64_s20, 1024, %s66_s22, [#allocation9], %s3550_s9, %s3550_s9, %s3551_s10  }
   0xf   :  { %3541 = dma.done.wait [#allocation3], 7168  }
  0x10   :  { %3542 = vsyncadd [#allocation3], 4294960128 }
  0x11   :  { %3543 = dma.done.wait [#allocation6], 8192  }
  0x12   :  { %3544 = vsyncadd [#allocation6], 4294959104 }
  0x13   :  { %3545 = dma.done.wait [#allocation9], 1024  }
  0x14   :  { %3546 = vsyncadd [#allocation9], 4294966272  ;;  %v3126_v0 = vld [vmem:[#allocation5 + $0x38] sm:$0xff]  ;;  %v3125_v1 = vld [vmem:[#allocation5 + $0x30] sm:$0xff]  ;;  %s2504_s28 = sshll.u32 %s4216_s7, 4  ;;  %s3558_s29 = smov 128   ;;  %s2505_s28 = int_to_ptr.hbm [resolvable:$true] %s2504_s28 }
  0x15   :  { %3191 = vmatpush.bf16.msra.mxu1 %v3126_v0  ;;  %3192 = vmatpush.bf16.msra.mxu2 %v3126_v0  ;;  %v3124_v2 = vld [vmem:[#allocation5 + $0x28] sm:$0xff]  ;;  %v3123_v3 = vld [vmem:[#allocation5 + $0x20] sm:$0xff]  ;;  %v3122_v4 = vld [vmem:[#allocation5 + $0x18] sm:$0xff]  ;;  %s3559_s30 = smov 8  }
  0x16   :  { %3193 = vmatpush.bf16.msra.mxu3 %v3126_v0  ;;  %894 = vmatpush.bf16.msra.mxu0 %v3126_v0  ;;  %v3121_v5 = vld [vmem:[#allocation5 + $0x10] sm:$0xff]  ;;  %v3120_v6 = vld [vmem:[#allocation5 + $0x8] sm:$0xff]  ;;  %v3119_v7 = vld [vmem:[#allocation5] sm:$0xff] }
  0x17   :  { %v2577_v8 = vld [vmem:[#allocation2 + $0x70] sm:$0xf]  ;;  %v3080_v9 = vld [vmem:[#allocation2 + $0x88] sm:$0xf0]  ;;  %v2633_v10 = vld [vmem:[#allocation2 + $0xe0] sm:$0xf] }
  0x18   :  { %v3094_v11 = vld [vmem:[#allocation2 + $0xf8] sm:$0xf0]  ;;  %v2689_v13 = vld [vmem:[#allocation2 + $0x150] sm:$0xf]  ;;  %v3108_v14 = vld [vmem:[#allocation2 + $0x168] sm:$0xf0]  ;;  %v2578_v17 = vor.u32 %v3080_v9, %v2577_v8 }
  0x19   :  { %3194 = vmatpush.bf16.msra.mxu1 %v3125_v1  ;;  %3195 = vmatpush.bf16.msra.mxu2 %v3125_v1  ;;  %v3142_v12 = vld [vmem:[#allocation5 + $0xb8] sm:$0xff]  ;;  %v2634_v18 = vor.u32 %v3094_v11, %v2633_v10  ;;  %v2690_v19 = vor.u32 %v3108_v14, %v2689_v13  ;;  %v2521_v20 = vld [vmem:[#allocation2] sm:$0xf]  ;;  %v3141_v22 = vld [vmem:[#allocation5 + $0xb0] sm:$0xff] }
  0x1a   :  { %3196 = vmatpush.bf16.msra.mxu3 %v3125_v1  ;;  %895 = vmatpush.bf16.msra.mxu0 %v3125_v1  ;;  %v3134_v15 = vld [vmem:[#allocation5 + $0x78] sm:$0xff]  ;;  %v3133_v24 = vld [vmem:[#allocation5 + $0x70] sm:$0xff]  ;;  %v3140_v27 = vld [vmem:[#allocation5 + $0xa8] sm:$0xff] }
  0x1b   :  { %v3150_v16 = vld [vmem:[#allocation5 + $0xf8] sm:$0xff]  ;;  %v3149_v25 = vld [vmem:[#allocation5 + $0xf0] sm:$0xff]  ;;  %v3132_v29 = vld [vmem:[#allocation5 + $0x68] sm:$0xff] }
  0x1c   :  { %v3066_v21 = vld [vmem:[#allocation2 + $0x18] sm:$0xf0]  ;;  %v3157_v28 = vld [vmem:[#allocation5 + $0x130] sm:$0xff]  ;;  %v3148_v30 = vld [vmem:[#allocation5 + $0xe8] sm:$0xff] }
  0x1d   :  { %3197 = vmatpush.bf16.msra.mxu1 %v3124_v2  ;;  %3198 = vmatpush.bf16.msra.mxu2 %v3124_v2  ;;  %v3158_v23 = vld [vmem:[#allocation5 + $0x138] sm:$0xff]  ;;  %v2522_v26 = vor.u32 %v3066_v21, %v2521_v20  ;;  %v3139_v31 = vld [vmem:[#allocation5 + $0xa0] sm:$0xff]  ;;  %v3156_v32 = vld [vmem:[#allocation5 + $0x128] sm:$0xff] }
  0x1e   :  { %3199 = vmatpush.bf16.msra.mxu3 %v3124_v2  ;;  %896 = vmatpush.bf16.msra.mxu0 %v3124_v2  ;;  %v3131_v33 = vld [vmem:[#allocation5 + $0x60] sm:$0xff]  ;;  %v2605_v35 = vld [vmem:[#allocation2 + $0xa8] sm:$0xf]  ;;  %v2661_v37 = vld [vmem:[#allocation2 + $0x118] sm:$0xf] }
  0x1f   :  { %v3147_v34 = vld [vmem:[#allocation5 + $0xe0] sm:$0xff]  ;;  %v3101_v38 = vld [vmem:[#allocation2 + $0x130] sm:$0xf0]  ;;  %v3138_v39 = vld [vmem:[#allocation5 + $0x98] sm:$0xff] }
  0x20   :  { %v3087_v36 = vld [vmem:[#allocation2 + $0xc0] sm:$0xf0]  ;;  %v2717_v40 = vld [vmem:[#allocation2 + $0x188] sm:$0xf]  ;;  %v3130_v43 = vld [vmem:[#allocation5 + $0x58] sm:$0xff]  ;;  %v2662_v46 = vor.u32 %v3101_v38, %v2661_v37 }
  0x21   :  { %3200 = vmatpush.bf16.msra.mxu1 %v3123_v3  ;;  %3201 = vmatpush.bf16.msra.mxu2 %v3123_v3  ;;  %v3115_v41 = vld [vmem:[#allocation2 + $0x1a0] sm:$0xf0]  ;;  %v3146_v44 = vld [vmem:[#allocation5 + $0xd8] sm:$0xff]  ;;  %v2606_v45 = vor.u32 %v3087_v36, %v2605_v35  ;;  %v3073_v49 = vld [vmem:[#allocation2 + $0x50] sm:$0xf0] }
  0x22   :  { %3202 = vmatpush.bf16.msra.mxu3 %v3123_v3  ;;  %897 = vmatpush.bf16.msra.mxu0 %v3123_v3  ;;  %v3155_v42 = vld [vmem:[#allocation5 + $0x120] sm:$0xff]  ;;  %v2718_v47 = vor.u32 %v3115_v41, %v2717_v40  ;;  %v2549_v48 = vld [vmem:[#allocation2 + $0x38] sm:$0xf]  ;;  %v3137_v50 = vld [vmem:[#allocation5 + $0x90] sm:$0xff] }
  0x23   :  { %v3154_v51 = vld [vmem:[#allocation5 + $0x118] sm:$0xff]  ;;  %v3129_v52 = vld [vmem:[#allocation5 + $0x50] sm:$0xff]  ;;  %v2550_v54 = vor.u32 %v3073_v49, %v2549_v48  ;;  %v3136_v55 = vld [vmem:[#allocation5 + $0x88] sm:$0xff] }
  0x24   :  { %v3145_v53 = vld [vmem:[#allocation5 + $0xd0] sm:$0xff]  ;;  %v3128_v57 = vld [vmem:[#allocation5 + $0x48] sm:$0xff]  ;;  %v3135_v59 = vld [vmem:[#allocation5 + $0x80] sm:$0xff] }
  0x25   :  { %3203 = vmatpush.bf16.msra.mxu1 %v3122_v4  ;;  %3204 = vmatpush.bf16.msra.mxu2 %v3122_v4  ;;  %v3153_v56 = vld [vmem:[#allocation5 + $0x110] sm:$0xff]  ;;  %v3144_v58 = vld [vmem:[#allocation5 + $0xc8] sm:$0xff]  ;;  %v3127_v61 = vld [vmem:[#allocation5 + $0x40] sm:$0xff] }
  0x26   :  { %3205 = vmatpush.bf16.msra.mxu3 %v3122_v4  ;;  %898 = vmatpush.bf16.msra.mxu0 %v3122_v4  ;;  %v3152_v60 = vld [vmem:[#allocation5 + $0x108] sm:$0xff]  ;;  %v3143_v62 = vld [vmem:[#allocation5 + $0xc0] sm:$0xff]  ;;  %v3174_v0 = vld [vmem:[#allocation5 + $0x1b8] sm:$0xff] }
  0x27   :  { %v3063_v63 = vld [vmem:[#allocation2 + $0x4] sm:$0xf]  ;;  %v3166_v1 = vld [vmem:[#allocation5 + $0x178] sm:$0xff]  ;;  %v2523_v2 = vld [vmem:[#allocation2 + $0x1c] sm:$0xf0] }
  0x28   :  { %v2529_v3 = vld [vmem:[#allocation2 + $0x8] sm:$0xf]  ;;  %v3067_v4 = vld [vmem:[#allocation2 + $0x20] sm:$0xf0]  ;;  %v2526_v8 = vor.u32 %v3063_v63, %v2523_v2  ;;  %v2537_v11 = vld [vmem:[#allocation2 + $0x10] sm:$0xf] }
  0x29   :  { %3206 = vmatpush.bf16.msra.mxu1 %v3121_v5  ;;  %3207 = vmatpush.bf16.msra.mxu2 %v3121_v5  ;;  %v2530_v9 = vor.u32 %v3067_v4, %v2529_v3  ;;  %v3173_v13 = vld [vmem:[#allocation5 + $0x1b0] sm:$0xff]  ;;  %v2557_v20 = vld [vmem:[#allocation2 + $0x40] sm:$0xf]  ;;  %v3074_v21 = vld [vmem:[#allocation2 + $0x58] sm:$0xf0] }
  0x2a   :  { %3208 = vmatpush.bf16.msra.mxu3 %v3121_v5  ;;  %899 = vmatpush.bf16.msra.mxu0 %v3121_v5  ;;  %v3064_v5 = vld [vmem:[#allocation2 + $0xc] sm:$0xf]  ;;  %v3165_v14 = vld [vmem:[#allocation5 + $0x170] sm:$0xff]  ;;  %v3078_v36 = vld [vmem:[#allocation2 + $0x7c] sm:$0xf] }
  0x2b   :  { %v3081_v35 = vld [vmem:[#allocation2 + $0x90] sm:$0xf0]  ;;  %v2587_v37 = vld [vmem:[#allocation2 + $0x94] sm:$0xf0]  ;;  %v2593_v41 = vld [vmem:[#allocation2 + $0x80] sm:$0xf] }
  0x2c   :  { %v2590_v40 = vor.u32 %v3078_v36, %v2587_v37  ;;  %v2613_v48 = vld [vmem:[#allocation2 + $0xb0] sm:$0xf]  ;;  %v3088_v49 = vld [vmem:[#allocation2 + $0xc8] sm:$0xf0]  ;;  %v3095_v63 = vld [vmem:[#allocation2 + $0x100] sm:$0xf0] }
  0x2d   :  { %3209 = vmatpush.bf16.msra.mxu1 %v3120_v6  ;;  %3210 = vmatpush.bf16.msra.mxu2 %v3120_v6  ;;  %v3617_v37 = vld [vmem:[%s4211_s2] ss:$0 sm:$0xff] }
  0x2e   :  { %3211 = vmatpush.bf16.msra.mxu3 %v3120_v6  ;;  %900 = vmatpush.bf16.msra.mxu0 %v3120_v6  ;;  %v2531_v6 = vld [vmem:[#allocation2 + $0x24] sm:$0xf0] }
  0x2f   :  { %v2534_v10 = vor.u32 %v3064_v5, %v2531_v6  ;;  %v2649_v5 = vld [vmem:[#allocation2 + $0xf0] sm:$0xf]  ;;  %v3096_v6 = vld [vmem:[#allocation2 + $0x108] sm:$0xf0] }
  0x31   :  { %3212 = vmatpush.bf16.msra.mxu1 %v3119_v7  ;;  %3213 = vmatpush.bf16.msra.mxu2 %v3119_v7 }
  0x32   :  { %3214 = vmatpush.bf16.msra.mxu3 %v3119_v7  ;;  %901 = vmatpush.bf16.msra.mxu0 %v3119_v7  ;;  %v3151_v7 = vld [vmem:[#allocation5 + $0x100] sm:$0xff] }
  0x34   :  { %912 = vmatmul.bf16.vlgmr.msra.gmra.mxu1 %v2578_v17  ;;  %922 = vmatmul.bf16.vlgmr.msra.gmra.mxu2 %v2634_v18  ;;  %v3164_v17 = vld [vmem:[#allocation5 + $0x168] sm:$0xff]  ;;  %v3070_v18 = vld [vmem:[#allocation2 + $0x3c] sm:$0xf] }
  0x35   :  { %992 = vmatpush.bf16.msrb.mxu2 %v3142_v12  ;;  %943 = vmatpush.bf16.msrb.mxu1 %v3134_v15  ;;  %v3068_v12 = vld [vmem:[#allocation2 + $0x28] sm:$0xf0] }
  0x36   :  { %1041 = vmatpush.bf16.msrb.mxu3 %v3150_v16  ;;  %1090 = vmatpush.bf16.msrb.mxu0 %v3158_v23  ;;  %v2538_v15 = vor.u32 %v3068_v12, %v2537_v11  ;;  %v3172_v16 = vld [vmem:[#allocation5 + $0x1a8] sm:$0xff]  ;;  %v2559_v23 = vld [vmem:[#allocation2 + $0x5c] sm:$0xf0]  ;;  %v2663_v11 = vld [vmem:[#allocation2 + $0x134] sm:$0xf0] }
  0x37   :  { %932 = vmatmul.bf16.vlgmr.msra.gmra.mxu3 %v2690_v19  ;;  %902 = vmatmul.bf16.vlgmr.msra.gmra.mxu0 %v2522_v26  ;;  %v2551_v19 = vld [vmem:[#allocation2 + $0x54] sm:$0xf0]  ;;  %v2669_v12 = vld [vmem:[#allocation2 + $0x120] sm:$0xf] }
  0x39   :  { %993 = vmatpush.bf16.msrb.mxu2 %v3141_v22  ;;  %944 = vmatpush.bf16.msrb.mxu1 %v3133_v24  ;;  %v3071_v22 = vld [vmem:[#allocation2 + $0x44] sm:$0xf]  ;;  %v2554_v24 = vor.u32 %v3070_v18, %v2551_v19  ;;  %v2677_v19 = vld [vmem:[#allocation2 + $0x128] sm:$0xf] }
  0x3a   :  { %1042 = vmatpush.bf16.msrb.mxu3 %v3149_v25  ;;  %1091 = vmatpush.bf16.msrb.mxu0 %v3157_v28  ;;  %v2558_v25 = vor.u32 %v3074_v21, %v2557_v20  ;;  %v2562_v26 = vor.u32 %v3071_v22, %v2559_v23  ;;  %v3075_v28 = vld [vmem:[#allocation2 + $0x60] sm:$0xf0] }
  0x3b   :  { %v3103_v20 = vld [vmem:[#allocation2 + $0x140] sm:$0xf0] }
  0x3c   :  { %v2678_v21 = vor.u32 %v3103_v20, %v2677_v19  ;;  %v3167_v22 = vld [vmem:[#allocation5 + $0x180] sm:$0xff]  ;;  %v2573_v19 = vld [vmem:[#allocation2 + $0x50] sm:$0xf]  ;;  %v3076_v20 = vld [vmem:[#allocation2 + $0x68] sm:$0xf0] }
  0x3d   :  { %994 = vmatpush.bf16.msrb.mxu2 %v3140_v27  ;;  %945 = vmatpush.bf16.msrb.mxu1 %v3132_v29  ;;  %v2565_v27 = vld [vmem:[#allocation2 + $0x48] sm:$0xf]  ;;  %v3159_v23 = vld [vmem:[#allocation5 + $0x140] sm:$0xff] }
  0x3e   :  { %1043 = vmatpush.bf16.msrb.mxu3 %v3148_v30  ;;  %1092 = vmatpush.bf16.msrb.mxu0 %v3156_v32  ;;  %v2566_v29 = vor.u32 %v3075_v28, %v2565_v27  ;;  %v3171_v30 = vld [vmem:[#allocation5 + $0x1a0] sm:$0xff]  ;;  %v3077_v32 = vld [vmem:[#allocation2 + $0x74] sm:$0xf]  ;;  %v3106_v28 = vld [vmem:[#allocation2 + $0x15c] sm:$0xf] }
  0x3f   :  { %v3109_v27 = vld [vmem:[#allocation2 + $0x170] sm:$0xf0] }
  0x41   :  { %995 = vmatpush.bf16.msrb.mxu2 %v3139_v31  ;;  %946 = vmatpush.bf16.msrb.mxu1 %v3131_v33  ;;  %v3163_v31 = vld [vmem:[#allocation5 + $0x160] sm:$0xff]  ;;  %v2579_v33 = vld [vmem:[#allocation2 + $0x8c] sm:$0xf0] }
  0x42   :  { %1044 = vmatpush.bf16.msrb.mxu3 %v3147_v34  ;;  %1093 = vmatpush.bf16.msrb.mxu0 %v3155_v42  ;;  %v2585_v34 = vld [vmem:[#allocation2 + $0x78] sm:$0xf]  ;;  %v2582_v38 = vor.u32 %v3077_v32, %v2579_v33  ;;  %v3082_v42 = vld [vmem:[#allocation2 + $0x98] sm:$0xf0] }
  0x44   :  { %917 = vmatmul.bf16.gmra.mxu1 %v2606_v45  ;;  %927 = vmatmul.bf16.gmra.mxu2 %v2662_v46  ;;  %v3162_v45 = vld [vmem:[#allocation5 + $0x158] sm:$0xff]  ;;  %v3084_v46 = vld [vmem:[#allocation2 + $0xac] sm:$0xf] }
  0x45   :  { %996 = vmatpush.bf16.msrb.mxu2 %v3138_v39  ;;  %947 = vmatpush.bf16.msrb.mxu1 %v3130_v43  ;;  %v2586_v39 = vor.u32 %v3081_v35, %v2585_v34  ;;  %v2594_v43 = vor.u32 %v3082_v42, %v2593_v41  ;;  %v2705_v34 = vld [vmem:[#allocation2 + $0x160] sm:$0xf]  ;;  %v3110_v35 = vld [vmem:[#allocation2 + $0x178] sm:$0xf0] }
  0x46   :  { %1045 = vmatpush.bf16.msrb.mxu3 %v3146_v44  ;;  %1094 = vmatpush.bf16.msrb.mxu0 %v3154_v51  ;;  %v3170_v44 = vld [vmem:[#allocation5 + $0x198] sm:$0xff]  ;;  %v2615_v51 = vld [vmem:[#allocation2 + $0xcc] sm:$0xf0]  ;;  %v2706_v36 = vor.u32 %v3110_v35, %v2705_v34 }
  0x47   :  { %937 = vmatmul.bf16.gmra.mxu3 %v2718_v47  ;;  %907 = vmatmul.bf16.gmra.mxu0 %v2550_v54  ;;  %v2607_v47 = vld [vmem:[#allocation2 + $0xc4] sm:$0xf0] }
  0x49   :  { %997 = vmatpush.bf16.msrb.mxu2 %v3137_v50  ;;  %948 = vmatpush.bf16.msrb.mxu1 %v3129_v52  ;;  %v3085_v50 = vld [vmem:[#allocation2 + $0xb4] sm:$0xf]  ;;  %v2610_v52 = vor.u32 %v3084_v46, %v2607_v47  ;;  %v3116_v46 = vld [vmem:[#allocation2 + $0x1a8] sm:$0xf0] }
  0x4a   :  { %1046 = vmatpush.bf16.msrb.mxu3 %v3145_v53  ;;  %1095 = vmatpush.bf16.msrb.mxu0 %v3153_v56  ;;  %v2614_v53 = vor.u32 %v3088_v49, %v2613_v48  ;;  %v2618_v54 = vor.u32 %v3085_v50, %v2615_v51  ;;  %v3089_v56 = vld [vmem:[#allocation2 + $0xd0] sm:$0xf0]  ;;  %v2727_v48 = vld [vmem:[#allocation2 + $0x1ac] sm:$0xf0] }
  0x4b   :  { %v3113_v47 = vld [vmem:[#allocation2 + $0x194] sm:$0xf] }
  0x4d   :  { %998 = vmatpush.bf16.msrb.mxu2 %v3136_v55  ;;  %949 = vmatpush.bf16.msrb.mxu1 %v3128_v57  ;;  %v2621_v55 = vld [vmem:[#allocation2 + $0xb8] sm:$0xf] }
  0x4e   :  { %1047 = vmatpush.bf16.msrb.mxu3 %v3144_v58  ;;  %1096 = vmatpush.bf16.msrb.mxu0 %v3152_v60  ;;  %v2622_v57 = vor.u32 %v3089_v56, %v2621_v55  ;;  %v3169_v58 = vld [vmem:[#allocation5 + $0x190] sm:$0xff]  ;;  %v3091_v60 = vld [vmem:[#allocation2 + $0xe4] sm:$0xf]  ;;  %v2730_v55 = vor.u32 %v3113_v47, %v2727_v48  ;;  %v2733_v56 = vld [vmem:[#allocation2 + $0x198] sm:$0xf] }
  0x51   :  { %999 = vmatpush.bf16.msrb.mxu2 %v3135_v59  ;;  %950 = vmatpush.bf16.msrb.mxu1 %v3127_v61  ;;  %v3161_v59 = vld [vmem:[#allocation5 + $0x150] sm:$0xff]  ;;  %v2635_v61 = vld [vmem:[#allocation2 + $0xfc] sm:$0xf0] }
  0x52   :  { %1048 = vmatpush.bf16.msrb.mxu3 %v3143_v62  ;;  %1097 = vmatpush.bf16.msrb.mxu0 %v3151_v7  ;;  %v2641_v62 = vld [vmem:[#allocation2 + $0xe8] sm:$0xf]  ;;  %v2638_v2 = vor.u32 %v3091_v60, %v2635_v61  ;;  %v2650_v7 = vor.u32 %v3096_v6, %v2649_v5 }
  0x53   :  { %v2642_v3 = vor.u32 %v3095_v63, %v2641_v62 }
  0x54   :  { %951 = vmatmul.bf16.vlgmr.msrb.gmra.mxu1 %v2526_v8  ;;  %1000 = vmatmul.bf16.vlgmr.msrb.gmra.mxu2 %v2530_v9  ;;  %v3168_v8 = vld [vmem:[#allocation5 + $0x188] sm:$0xff] }
  0x55   :  { %1188 = vmatpush.bf16.msra.mxu2 %v3174_v0  ;;  %1139 = vmatpush.bf16.msra.mxu1 %v3166_v1  ;;  %v3092_v0 = vld [vmem:[#allocation2 + $0xec] sm:$0xf]  ;;  %v2643_v1 = vld [vmem:[#allocation2 + $0x104] sm:$0xf0] }
  0x56   :  { %v2646_v4 = vor.u32 %v3092_v0, %v2643_v1  ;;  %v3160_v9 = vld [vmem:[#allocation5 + $0x148] sm:$0xff]  ;;  %v3065_v1 = vld [vmem:[#allocation2 + $0x14] sm:$0xf] }
  0x57   :  { %1049 = vmatmul.bf16.vlgmr.msrb.gmra.mxu3 %v2534_v10  ;;  %1098 = vmatmul.bf16.vlgmr.msrb.gmra.mxu0 %v2538_v15  ;;  %v3098_v10 = vld [vmem:[#allocation2 + $0x11c] sm:$0xf]  ;;  %v2671_v15 = vld [vmem:[#allocation2 + $0x13c] sm:$0xf0] }
  0x59   :  { %1189 = vmatpush.bf16.msra.mxu2 %v3173_v13  ;;  %1140 = vmatpush.bf16.msra.mxu1 %v3165_v14  ;;  %v3102_v13 = vld [vmem:[#allocation2 + $0x138] sm:$0xf0]  ;;  %v3099_v14 = vld [vmem:[#allocation2 + $0x124] sm:$0xf] }
  0x5a   :  { %v2674_v18 = vor.u32 %v3099_v14, %v2671_v15 }
  0x5d   :  { %1190 = vmatpush.bf16.msra.mxu2 %v3172_v16  ;;  %1141 = vmatpush.bf16.msra.mxu1 %v3164_v17  ;;  %v2666_v16 = vor.u32 %v3098_v10, %v2663_v11  ;;  %v2670_v17 = vor.u32 %v3102_v13, %v2669_v12 }
  0x61   :  { %1191 = vmatpush.bf16.msra.mxu2 %v3171_v30  ;;  %1142 = vmatpush.bf16.msra.mxu1 %v3163_v31 }
  0x64   :  { %956 = vmatmul.bf16.gmra.mxu1 %v2554_v24  ;;  %1005 = vmatmul.bf16.gmra.mxu2 %v2558_v25  ;;  %v3105_v24 = vld [vmem:[#allocation2 + $0x154] sm:$0xf]  ;;  %v2691_v25 = vld [vmem:[#allocation2 + $0x16c] sm:$0xf0] }
  0x65   :  { %1192 = vmatpush.bf16.msra.mxu2 %v3170_v44  ;;  %1143 = vmatpush.bf16.msra.mxu1 %v3162_v45  ;;  %v2694_v30 = vor.u32 %v3105_v24, %v2691_v25  ;;  %v2719_v44 = vld [vmem:[#allocation2 + $0x1a4] sm:$0xf0]  ;;  %v2725_v45 = vld [vmem:[#allocation2 + $0x190] sm:$0xf] }
  0x67   :  { %1054 = vmatmul.bf16.gmra.mxu3 %v2562_v26  ;;  %1103 = vmatmul.bf16.gmra.mxu0 %v2566_v29  ;;  %v2697_v26 = vld [vmem:[#allocation2 + $0x158] sm:$0xf] }
  0x68   :  { %v2699_v29 = vld [vmem:[#allocation2 + $0x174] sm:$0xf0]  ;;  %v2698_v31 = vor.u32 %v3109_v27, %v2697_v26  ;;  %v2574_v27 = vor.u32 %v3076_v20, %v2573_v19  ;;  %v3097_v20 = vld [vmem:[#allocation2 + $0x110] sm:$0xf0] }
  0x69   :  { %1193 = vmatpush.bf16.msra.mxu2 %v3169_v58  ;;  %1144 = vmatpush.bf16.msra.mxu1 %v3161_v59  ;;  %v2702_v33 = vor.u32 %v3106_v28, %v2699_v29  ;;  %v3182_v28 = vld [vmem:[#allocation7 + $0x38] sm:$0xff] }
  0x6a   :  { %1617 = vmatpush.bf16.msra.mxu3 %v3182_v28  ;;  %v2657_v19 = vld [vmem:[#allocation2 + $0xf8] sm:$0xf] }
  0x6d   :  { %1194 = vmatpush.bf16.msra.mxu2 %v3168_v8  ;;  %1145 = vmatpush.bf16.msra.mxu1 %v3160_v9 }
  0x71   :  { %1195 = vmatpush.bf16.msra.mxu2 %v3167_v22  ;;  %1146 = vmatpush.bf16.msra.mxu1 %v3159_v23 }
  0x74   :  { %961 = vmatmul.bf16.gmra.mxu1 %v2582_v38  ;;  %1010 = vmatmul.bf16.gmra.mxu2 %v2586_v39 }
  0x77   :  { %1059 = vmatmul.bf16.gmra.mxu3 %v2590_v40  ;;  %1108 = vmatmul.bf16.gmra.mxu0 %v2594_v43  ;;  %v3112_v43 = vld [vmem:[#allocation2 + $0x18c] sm:$0xf] }
  0x84   :  { %966 = vmatmul.bf16.gmra.mxu1 %v2610_v52  ;;  %1015 = vmatmul.bf16.gmra.mxu2 %v2614_v53  ;;  %v2722_v52 = vor.u32 %v3112_v43, %v2719_v44  ;;  %v2726_v53 = vor.u32 %v3116_v46, %v2725_v45  ;;  %v2601_v43 = vld [vmem:[#allocation2 + $0x88] sm:$0xf]  ;;  %v3083_v44 = vld [vmem:[#allocation2 + $0xa0] sm:$0xf0] }
  0x87   :  { %1064 = vmatmul.bf16.gmra.mxu3 %v2618_v54  ;;  %1113 = vmatmul.bf16.gmra.mxu0 %v2622_v57  ;;  %v3117_v57 = vld [vmem:[#allocation2 + $0x1b0] sm:$0xf0] }
  0x88   :  { %v2734_v58 = vor.u32 %v3117_v57, %v2733_v56 }
  0x94   :  { %971 = vmatmul.bf16.gmra.mxu1 %v2638_v2  ;;  %1020 = vmatmul.bf16.gmra.mxu2 %v2642_v3  ;;  %v2539_v2 = vld [vmem:[#allocation2 + $0x2c] sm:$0xf0]  ;;  %v2545_v3 = vld [vmem:[#allocation2 + $0x18] sm:$0xf] }
  0x95   :  { %v2542_v8 = vor.u32 %v3065_v1, %v2539_v2  ;;  %v3086_v1 = vld [vmem:[#allocation2 + $0xbc] sm:$0xf]  ;;  %v2629_v2 = vld [vmem:[#allocation2 + $0xc0] sm:$0xf] }
  0x97   :  { %1069 = vmatmul.bf16.gmra.mxu3 %v2646_v4  ;;  %1118 = vmatmul.bf16.gmra.mxu0 %v2650_v7  ;;  %v3069_v4 = vld [vmem:[#allocation2 + $0x30] sm:$0xf0] }
  0x98   :  { %v2546_v9 = vor.u32 %v3069_v4, %v2545_v3  ;;  %v3090_v3 = vld [vmem:[#allocation2 + $0xd8] sm:$0xf0] }
  0xa4   :  { %976 = vmatmul.bf16.gmra.mxu1 %v2666_v16  ;;  %1025 = vmatmul.bf16.gmra.mxu2 %v2670_v17  ;;  %v3072_v17 = vld [vmem:[#allocation2 + $0x4c] sm:$0xf] }
  0xa7   :  { %1074 = vmatmul.bf16.gmra.mxu3 %v2674_v18  ;;  %1123 = vmatmul.bf16.gmra.mxu0 %v2678_v21  ;;  %v2567_v18 = vld [vmem:[#allocation2 + $0x64] sm:$0xf0] }
  0xa8   :  { %v2570_v26 = vor.u32 %v3072_v17, %v2567_v18  ;;  %v3093_v18 = vld [vmem:[#allocation2 + $0xf4] sm:$0xf] }
  0xb1   :  { %v3612_v32 = vpop.f32.mrf.mxu1 }
  0xb2   :  { %v914_v47 = vadd.f32 %v3617_v37, %v3612_v32  ;;  %v2623_v32 = vld [vmem:[#allocation2 + $0xd4] sm:$0xf0] }
  0xb4   :  { %981 = vmatmul.bf16.gmra.mxu1 %v2694_v30  ;;  %1030 = vmatmul.bf16.gmra.mxu2 %v2698_v31  ;;  %v903_v0 = vpop.f32.mrf.mxu0 }
  0xb5   :  { %v904_v6 = vadd.f32 %v3617_v37, %v903_v0 }
  0xb7   :  { %1079 = vmatmul.bf16.gmra.mxu3 %v2702_v33  ;;  %v923_v38 = vpop.f32.mrf.mxu2  ;;  %1128 = vmatmul.bf16.gmra.mxu0 %v2706_v36 }
  0xb8   :  { %v3620_v39 = vadd.f32 %v3617_v37, %v923_v38  ;;  %v3079_v38 = vld [vmem:[#allocation2 + $0x84] sm:$0xf] }
  0xb9   :  { %v3622_v41 = vpop.f32.mrf.mxu1 }
  0xba   :  { %v933_v40 = vpop.f32.mrf.mxu3 }
  0xbb   :  { %v3625_v42 = vadd.f32 %v3617_v37, %v933_v40  ;;  %v2595_v40 = vld [vmem:[#allocation2 + $0x9c] sm:$0xf0] }
  0xbc   :  { %v905_v12 = vpop.f32.mrf.mxu0 }
  0xbd   :  { %v906_v16 = vadd.f32 %v3617_v37, %v905_v12 }
  0xbf   :  { %v925_v49 = vpop.f32.mrf.mxu2 }
  0xc0   :  { %v3628_v50 = vadd.f32 %v3617_v37, %v925_v49  ;;  %v2598_v49 = vor.u32 %v3079_v38, %v2595_v40  ;;  %v3104_v38 = vld [vmem:[#allocation2 + $0x148] sm:$0xf0] }
  0xc1   :  { %v3632_v54 = vpop.f32.mrf.mxu1 }
  0xc2   :  { %v3630_v51 = vpop.f32.mrf.mxu3 }
  0xc4   :  { %986 = vmatmul.bf16.gmra.mxu1 %v2722_v52  ;;  %1035 = vmatmul.bf16.gmra.mxu2 %v2726_v53  ;;  %v908_v22 = vpop.f32.mrf.mxu0  ;;  %v2602_v52 = vor.u32 %v3083_v44, %v2601_v43  ;;  %v3181_v53 = vld [vmem:[#allocation7 + $0x30] sm:$0xff] }
  0xc5   :  { %v909_v24 = vadd.f32 %v3617_v37, %v908_v22  ;;  %1618 = vmatpush.bf16.msra.mxu3 %v3181_v53 }
  0xc7   :  { %1084 = vmatmul.bf16.gmra.mxu3 %v2730_v55  ;;  %v928_v59 = vpop.f32.mrf.mxu2  ;;  %1133 = vmatmul.bf16.gmra.mxu0 %v2734_v58  ;;  %v916_v58 = vadd.f32 %v3617_v37, %v3622_v41 }
  0xc8   :  { %v3635_v60 = vadd.f32 %v3617_v37, %v928_v59 }
  0xc9   :  { %v3637_v62 = vpop.f32.mrf.mxu1 }
  0xca   :  { %v938_v61 = vpop.f32.mrf.mxu3 }
  0xcb   :  { %v3640_v63 = vadd.f32 %v3617_v37, %v938_v61 }
  0xcc   :  { %v910_v34 = vpop.f32.mrf.mxu0 }
  0xcd   :  { %v911_v36 = vadd.f32 %v3617_v37, %v910_v34  ;;  %v3100_v34 = vld [vmem:[#allocation2 + $0x12c] sm:$0xf] }
  0xcf   :  { %v930_v5 = vpop.f32.mrf.mxu2 }
  0xd0   :  { %v3644_v7 = vadd.f32 %v3617_v37, %v930_v5  ;;  %v919_v5 = vadd.f32 %v3617_v37, %v3632_v54  ;;  %v2651_v54 = vld [vmem:[#allocation2 + $0x10c] sm:$0xf0] }
  0xd1   :  { %v952_v10 = vpop.f32.mrf.mxu1 }
  0xd2   :  { %v953_v11 = vadd.f32 %v952_v10, %v904_v6  ;;  %v3180_v10 = vld [vmem:[#allocation7 + $0x28] sm:$0xff] }
  0xd3   :  { %1619 = vmatpush.bf16.msra.mxu3 %v3180_v10  ;;  %v936_v10 = vadd.f32 %v3617_v37, %v3630_v51 }
  0xd4   :  { %1147 = vmatmul.bf16.vlgmr.msra.gmra.mxu1 %v2542_v8  ;;  %1196 = vmatmul.bf16.vlgmr.msra.gmra.mxu2 %v2546_v9  ;;  %v2626_v8 = vor.u32 %v3086_v1, %v2623_v32  ;;  %v2630_v9 = vor.u32 %v3090_v3, %v2629_v2  ;;  %v1099_v32 = vpop.f32.mrf.mxu0 }
  0xd7   :  { %v1001_v13 = vpop.f32.mrf.mxu2 }
  0xd8   :  { %v3646_v14 = vadd.f32 %v1001_v13, %v953_v11  ;;  %v921_v13 = vadd.f32 %v3617_v37, %v3637_v62 }
  0xd9   :  { %v954_v15 = vpop.f32.mrf.mxu1 }
  0xda   :  { %v955_v21 = vadd.f32 %v954_v15, %v906_v16 }
  0xdf   :  { %v1003_v23 = vpop.f32.mrf.mxu2 }
  0xe0   :  { %v3650_v25 = vadd.f32 %v1003_v23, %v955_v21  ;;  %v2654_v23 = vor.u32 %v3093_v18, %v2651_v54  ;;  %v2741_v18 = vld [vmem:[#allocation2 + $0x1a0] sm:$0xf]  ;;  %v3118_v54 = vld [vmem:[#allocation2 + $0x1b8] sm:$0xf0] }
  0xe1   :  { %v957_v29 = vpop.f32.mrf.mxu1 }
  0xe2   :  { %v958_v30 = vadd.f32 %v957_v29, %v909_v24  ;;  %v2658_v24 = vor.u32 %v3097_v20, %v2657_v19 }
  0xe4   :  { %1152 = vmatmul.bf16.gmra.mxu1 %v2570_v26  ;;  %1201 = vmatmul.bf16.gmra.mxu2 %v2574_v27  ;;  %v3179_v26 = vld [vmem:[#allocation7 + $0x20] sm:$0xff] }
  0xe5   :  { %1620 = vmatpush.bf16.msra.mxu3 %v3179_v26 }
  0xe7   :  { %v1006_v31 = vpop.f32.mrf.mxu2 }
  0xe8   :  { %v3652_v33 = vadd.f32 %v1006_v31, %v958_v30 }
  0xe9   :  { %v959_v35 = vpop.f32.mrf.mxu1 }
  0xea   :  { %v960_v45 = vadd.f32 %v959_v35, %v911_v36  ;;  %v2679_v35 = vld [vmem:[#allocation2 + $0x144] sm:$0xf0]  ;;  %v2685_v36 = vld [vmem:[#allocation2 + $0x130] sm:$0xf] }
  0xeb   :  { %v2682_v44 = vor.u32 %v3100_v34, %v2679_v35 }
  0xef   :  { %v1008_v46 = vpop.f32.mrf.mxu2 }
  0xf0   :  { %v3657_v48 = vadd.f32 %v1008_v46, %v960_v45  ;;  %v2686_v45 = vor.u32 %v3104_v38, %v2685_v36  ;;  %v3178_v46 = vld [vmem:[#allocation7 + $0x18] sm:$0xff] }
  0xf1   :  { %v962_v55 = vpop.f32.mrf.mxu1  ;;  %1621 = vmatpush.bf16.msra.mxu3 %v3178_v46 }
  0xf2   :  { %v963_v56 = vadd.f32 %v962_v55, %v914_v47  ;;  %v940_v47 = vpop.f32.mrf.mxu3 }
  0xf4   :  { %1157 = vmatmul.bf16.gmra.mxu1 %v2598_v49  ;;  %1206 = vmatmul.bf16.gmra.mxu2 %v2602_v52 }
  0xf7   :  { %v1011_v57 = vpop.f32.mrf.mxu2 }
  0xf8   :  { %v3661_v59 = vadd.f32 %v1011_v57, %v963_v56  ;;  %v3107_v57 = vld [vmem:[#allocation2 + $0x164] sm:$0xf] }
  0xf9   :  { %v964_v61 = vpop.f32.mrf.mxu1 }
  0xfa   :  { %v965_v0 = vadd.f32 %v964_v61, %v916_v58  ;;  %v1050_v56 = vpop.f32.mrf.mxu3  ;;  %v2707_v58 = vld [vmem:[#allocation2 + $0x17c] sm:$0xf0]  ;;  %v2713_v61 = vld [vmem:[#allocation2 + $0x168] sm:$0xf] }
  0xfb   :  { %v2710_v3 = vor.u32 %v3107_v57, %v2707_v58  ;;  %v1051_v38 = vadd.f32 %v1050_v56, %v3646_v14  ;;  %v3175_v57 = vld [vmem:[#allocation7] sm:$0xff] }
  0xff   :  { %v1013_v4 = vpop.f32.mrf.mxu2 }
 0x100   :  { %v3665_v6 = vadd.f32 %v1013_v4, %v965_v0  ;;  %v3111_v0 = vld [vmem:[#allocation2 + $0x180] sm:$0xf0]  ;;  %v3177_v4 = vld [vmem:[#allocation7 + $0x10] sm:$0xff] }
 0x101   :  { %v967_v11 = vpop.f32.mrf.mxu1  ;;  %1622 = vmatpush.bf16.msra.mxu3 %v3177_v4 }
 0x102   :  { %v968_v12 = vadd.f32 %v967_v11, %v919_v5 }
 0x104   :  { %1162 = vmatmul.bf16.gmra.mxu1 %v2626_v8  ;;  %1211 = vmatmul.bf16.gmra.mxu2 %v2630_v9  ;;  %v1052_v9 = vpop.f32.mrf.mxu3 }
 0x107   :  { %v1016_v41 = vpop.f32.mrf.mxu2 }
 0x108   :  { %v3669_v15 = vadd.f32 %v1016_v41, %v968_v12  ;;  %v1101_v41 = vpop.f32.mrf.mxu0 }
 0x109   :  { %v969_v16 = vpop.f32.mrf.mxu1 }
 0x10a   :  { %v970_v17 = vadd.f32 %v969_v16, %v921_v13  ;;  %v3114_v16 = vld [vmem:[#allocation2 + $0x19c] sm:$0xf] }
 0x10c   :  { %v1055_v20 = vpop.f32.mrf.mxu3 }
 0x10f   :  { %v1018_v21 = vpop.f32.mrf.mxu2 }
 0x110   :  { %v3671_v22 = vadd.f32 %v1018_v21, %v970_v17  ;;  %v2735_v17 = vld [vmem:[#allocation2 + $0x1b4] sm:$0xf0] }
 0x111   :  { %v972_v27 = vpop.f32.mrf.mxu1  ;;  %v2738_v21 = vor.u32 %v3114_v16, %v2735_v17 }
 0x112   :  { %v973_v28 = vadd.f32 %v972_v27, %v3620_v39  ;;  %v1104_v27 = vpop.f32.mrf.mxu0 }
 0x114   :  { %1167 = vmatmul.bf16.gmra.mxu1 %v2654_v23  ;;  %1216 = vmatmul.bf16.gmra.mxu2 %v2658_v24  ;;  %v2742_v23 = vor.u32 %v3118_v54, %v2741_v18 }
 0x117   :  { %v1021_v62 = vpop.f32.mrf.mxu2 }
 0x118   :  { %v3674_v29 = vadd.f32 %v1021_v62, %v973_v28  ;;  %v941_v28 = vadd.f32 %v3617_v37, %v940_v47 }
 0x119   :  { %v974_v30 = vpop.f32.mrf.mxu1 }
 0x11a   :  { %v975_v31 = vadd.f32 %v974_v30, %v3628_v50  ;;  %v1106_v35 = vpop.f32.mrf.mxu0 }
 0x11f   :  { %v1023_v40 = vpop.f32.mrf.mxu2 }
 0x120   :  { %v3677_v43 = vadd.f32 %v1023_v40, %v975_v31  ;;  %v1057_v31 = vpop.f32.mrf.mxu3 }
 0x121   :  { %v977_v39 = vpop.f32.mrf.mxu1 }
 0x122   :  { %v978_v49 = vadd.f32 %v977_v39, %v3635_v60  ;;  %v2714_v60 = vor.u32 %v3111_v0, %v2713_v61  ;;  %v3176_v39 = vld [vmem:[#allocation7 + $0x8] sm:$0xff]  ;;  %v1109_v37 = vpop.f32.mrf.mxu0  ;;  %v1056_v0 = vadd.f32 %v1055_v20, %v3652_v33 }
 0x123   :  { %1623 = vmatpush.bf16.msra.mxu3 %v3176_v39 }
 0x124   :  { %1172 = vmatmul.bf16.gmra.mxu1 %v2682_v44  ;;  %1221 = vmatmul.bf16.gmra.mxu2 %v2686_v45  ;;  %v1100_v45 = vadd.f32 %v1099_v32, %v1051_v38 }
 0x127   :  { %v1026_v52 = vpop.f32.mrf.mxu2  ;;  %1624 = vmatpush.bf16.msra.mxu3 %v3175_v57 }
 0x128   :  { %v3680_v53 = vadd.f32 %v1026_v52, %v978_v49  ;;  %v1053_v52 = vadd.f32 %v1052_v9, %v3650_v25 }
 0x129   :  { %v979_v50 = vpop.f32.mrf.mxu1 }
 0x12a   :  { %v980_v55 = vadd.f32 %v979_v50, %v3644_v7  ;;  %v1102_v58 = vadd.f32 %v1101_v41, %v1053_v52 }
 0x12f   :  { %v1028_v1 = vpop.f32.mrf.mxu2 }
 0x130   :  { %v3683_v2 = vadd.f32 %v1028_v1, %v980_v55 }
 0x131   :  { %v982_v5 = vpop.f32.mrf.mxu1 }
 0x132   :  { %v983_v8 = vadd.f32 %v982_v5, %v3625_v42  ;;  %v1105_v5 = vadd.f32 %v1104_v27, %v1056_v0 }
 0x134   :  { %1177 = vmatmul.bf16.gmra.mxu1 %v2710_v3  ;;  %1226 = vmatmul.bf16.gmra.mxu2 %v2714_v60  ;;  %v1111_v60 = vpop.f32.mrf.mxu0 }
 0x137   :  { %v1031_v7 = vpop.f32.mrf.mxu2 }
 0x138   :  { %v3688_v11 = vadd.f32 %v1031_v7, %v983_v8  ;;  %v1058_v7 = vadd.f32 %v1057_v31, %v3657_v48 }
 0x139   :  { %v984_v12 = vpop.f32.mrf.mxu1 }
 0x13a   :  { %v985_v13 = vadd.f32 %v984_v12, %v936_v10  ;;  %v1107_v18 = vadd.f32 %v1106_v35, %v1058_v7 }
 0x13c   :  { %v3704_v54 = vpop.f32.mrf.mxu0 }
 0x13f   :  { %v1033_v19 = vpop.f32.mrf.mxu2 }
 0x140   :  { %v3690_v42 = vadd.f32 %v1033_v19, %v985_v13 }
 0x141   :  { %v987_v24 = vpop.f32.mrf.mxu1 }
 0x142   :  { %v988_v26 = vadd.f32 %v987_v24, %v3640_v63  ;;  %v1060_v63 = vpop.f32.mrf.mxu3 }
 0x143   :  { %v1061_v24 = vadd.f32 %v1060_v63, %v3661_v59 }
 0x144   :  { %1182 = vmatmul.bf16.gmra.mxu1 %v2738_v21  ;;  %1231 = vmatmul.bf16.gmra.mxu2 %v2742_v23 }
 0x145   :  { %v1110_v35 = vadd.f32 %v1109_v37, %v1061_v24 }
 0x147   :  { %v1036_v51 = vpop.f32.mrf.mxu2 }
 0x148   :  { %v3694_v62 = vadd.f32 %v1036_v51, %v988_v26 }
 0x149   :  { %v989_v30 = vpop.f32.mrf.mxu1 }
 0x14a   :  { %v990_v34 = vadd.f32 %v989_v30, %v941_v28  ;;  %v1062_v14 = vpop.f32.mrf.mxu3 }
 0x14b   :  { %v1063_v38 = vadd.f32 %v1062_v14, %v3665_v6 }
 0x14f   :  { %v1038_v36 = vpop.f32.mrf.mxu2 }
 0x150   :  { %v3697_v40 = vadd.f32 %v1038_v36, %v990_v34 }
 0x151   :  { %v1148_v44 = vpop.f32.mrf.mxu1 }
 0x152   :  { %v1149_v46 = vadd.f32 %v1148_v44, %v1100_v45  ;;  %v3702_v10 = vpop.f32.mrf.mxu3  ;;  %v3713_v44 = vpop.f32.mrf.mxu0 }
 0x157   :  { %v1197_v49 = vpop.f32.mrf.mxu2 }
 0x158   :  { %v1198_v47 = vadd.f32 %v1197_v49, %v1149_v46 }
 0x159   :  { %v1150_v50 = vpop.f32.mrf.mxu1 }
 0x15a   :  { %v2967_v55 = vmul.f32 -1.442695, %v1198_v47  ;;  %v1151_v56 = vadd.f32 %v1150_v50, %v1102_v58  ;;  %v3707_v51 = vpop.f32.mrf.mxu3 }
 0x15c   :  { %3229 = vpow2.f32 %v2967_v55  ;;  %v1112_v55 = vadd.f32 %v1111_v60, %v1063_v38 }
 0x15f   :  { %v1199_v61 = vpop.f32.mrf.mxu2 }
 0x160   :  { %v1200_v1 = vadd.f32 %v1199_v61, %v1151_v56 }
 0x161   :  { %v1153_v32 = vpop.f32.mrf.mxu1 }
 0x162   :  { %v3230_v3 = vpop.eup %3229  ;;  %v2968_v4 = vmul.f32 -1.442695, %v1200_v1  ;;  %v1154_v8 = vadd.f32 %v1153_v32, %v1105_v5  ;;  %v3725_v60 = vpop.f32.mrf.mxu3 }
 0x163   :  { %v1285_v25 = vadd.f32 1.0, %v3230_v3 }
 0x164   :  { %3231 = vpow2.f32 %v2968_v4 }
 0x165   :  { %3233 = vrcp.f32 %v1285_v25  ;;  %vm1306_vm1 = vweird.f32 %v1285_v25  ;;  %v1310_v39 = vand.u32 2147483647, %v1285_v25  ;;  %v1312_v49 = vand.u32 2147483648, %v1285_v25 }
 0x167   :  { %v1202_v9 = vpop.f32.mrf.mxu2  ;;  %vm1311_vm5 = vcmp.eq.f32.partialorder %v1310_v39, 8.507059e+37  ;;  %v1313_v32 = vor.u32 1.1754944e-38, %v1312_v49 }
 0x168   :  { %v1203_v12 = vadd.f32 %v1202_v9, %v1154_v8 }
 0x169   :  { %v1155_v41 = vpop.f32.mrf.mxu1 }
 0x16a   :  { %v3232_v13 = vpop.eup %3231  ;;  %v2969_v16 = vmul.f32 -1.442695, %v1203_v12  ;;  %v1156_v21 = vadd.f32 %v1155_v41, %v1107_v18 }
 0x16b   :  { %v3234_v33 = vpop.eup %3233  ;;  %v1286_v17 = vadd.f32 1.0, %v3232_v13  ;;  %v1066_v13 = vadd.f32 %v3702_v10, %v3669_v15  ;;  %v1068_v15 = vadd.f32 %v3707_v51, %v3671_v22  ;;  %v1072_v10 = vpop.f32.mrf.mxu3 }
 0x16c   :  { %v1302_v19 = vmul.f32 %v3234_v33, %v1285_v25  ;;  %3235 = vpow2.f32 %v2969_v16  ;;  %vm1307_vm0 = vweird.f32 %v3234_v33  ;;  %v3732_v16 = vpop.f32.mrf.mxu0 }
 0x16d   :  { %3237 = vrcp.f32 %v1286_v17  ;;  %v1327_v52 = vand.u32 2147483648, %v1286_v17  ;;  %v1325_v37 = vand.u32 2147483647, %v1286_v17  ;;  %vm3715_vm3 = vmor %vm1306_vm1, %vm1307_vm0  ;;  %vm1321_vm4 = vweird.f32 %v1286_v17 }
 0x16e   :  { %v1303_v20 = vsub.f32 1.0, %v1302_v19  ;;  %v1115_v24 = vadd.f32 %v3704_v54, %v1066_v13  ;;  %v1117_v38 = vadd.f32 %v3713_v44, %v1068_v15  ;;  %v1073_v13 = vadd.f32 %v1072_v10, %v3677_v43 }
 0x16f   :  { %v1204_v23 = vpop.f32.mrf.mxu2  ;;  %v1328_v3 = vor.u32 1.1754944e-38, %v1327_v52  ;;  %vm1326_vm7 = vcmp.eq.f32.partialorder %v1325_v37, 8.507059e+37 }
 0x170   :  { %v1205_v48 = vadd.f32 %v1204_v23, %v1156_v21  ;;  %v1304_v30 = vmul.f32 %v3234_v33, %v1303_v20 }
 0x171   :  { %v1158_v26 = vpop.f32.mrf.mxu1 }
 0x172   :  { %v3236_v27 = vpop.eup %3235  ;;  %v2970_v28 = vmul.f32 -1.442695, %v1205_v48  ;;  %v1159_v45 = vadd.f32 %v1158_v26, %v1110_v35  ;;  %v1305_v63 = vadd.f32 %v3234_v33, %v1304_v30 }
 0x173   :  { %v3238_v31 = vpop.eup %3237  ;;  %v3709_v34 = vadd.f32 1.0, %v3236_v27 }
 0x174   :  { %v1317_v36 = vmul.f32 %v3238_v31, %v1286_v17  ;;  %3239 = vpow2.f32 %v2970_v28  ;;  %vm1322_vm2 = vweird.f32 %v3238_v31  ;;  %v1309_v56 = vsel %vm3715_vm3, %v3234_v33, %v1305_v63 }
 0x175   :  { %3241 = vrcp.f32 %v3709_v34  ;;  %vm1323_vm6 = vmor %vm1321_vm4, %vm1322_vm2  ;;  %v1314_v5 = vsel %vm1311_vm5, %v1313_v32, %v1309_v56  ;;  %vm1336_vm9 = vweird.f32 %v3709_v34  ;;  %v1340_v54 = vand.u32 2147483647, %v3709_v34 }
 0x176   :  { %v1318_v59 = vsub.f32 1.0, %v1317_v36 }
 0x177   :  { %v1207_v46 = vpop.f32.mrf.mxu2  ;;  %vm1341_vm13 = vcmp.eq.f32.partialorder %v1340_v54, 8.507059e+37 }
 0x178   :  { %v1208_v47 = vadd.f32 %v1207_v46, %v1159_v45  ;;  %v1319_v50 = vmul.f32 %v3238_v31, %v1318_v59  ;;  %v1121_v46 = vpop.f32.mrf.mxu0 }
 0x179   :  { %v1160_v57 = vpop.f32.mrf.mxu1 }
 0x17a   :  { %v3240_v58 = vpop.eup %3239  ;;  %v2971_v14 = vmul.f32 -1.442695, %v1208_v47  ;;  %v1320_v61 = vadd.f32 %v3238_v31, %v1319_v50  ;;  %v1161_v9 = vadd.f32 %v1160_v57, %v1112_v55 }
 0x17b   :  { %v3721_v0 = vpop.eup %3241  ;;  %v3723_v1 = vadd.f32 1.0, %v3240_v58 }
 0x17c   :  { %3243 = vpow2.f32 %v2971_v14  ;;  %v1324_v4 = vsel %vm1323_vm6, %v3238_v31, %v1320_v61  ;;  %v1332_v25 = vmul.f32 %v3721_v0, %v3709_v34  ;;  %vm1337_vm8 = vweird.f32 %v3721_v0 }
 0x17d   :  { %3245 = vrcp.f32 %v3723_v1  ;;  %v1329_v8 = vsel %vm1326_vm7, %v1328_v3, %v1324_v4  ;;  %v1342_v31 = vand.u32 2147483648, %v3709_v34  ;;  %v1357_v35 = vand.u32 2147483648, %v3723_v1  ;;  %vm3750_vm11 = vmor %vm1336_vm9, %vm1337_vm8 }
 0x17e   :  { %v1541_v7 = vpack.c.bf16 %v1329_v8, %v1314_v5  ;;  %v1333_v12 = vsub.f32 1.0, %v1332_v25  ;;  %v1355_v51 = vand.u32 2147483647, %v3723_v1  ;;  %vm1351_vm12 = vweird.f32 %v3723_v1 }
 0x17f   :  { %v1209_v41 = vpop.f32.mrf.mxu2  ;;  %v1343_v44 = vor.u32 1.1754944e-38, %v1342_v31  ;;  %v1358_v50 = vor.u32 1.1754944e-38, %v1357_v35 }
 0x180   :  { %v1210_v33 = vadd.f32 %v1209_v41, %v1161_v9  ;;  %1625 = vmatmul.bf16.vlgmr.msra.gmra.mxu3 %v1541_v7  ;;  %v1334_v20 = vmul.f32 %v3721_v0, %v1333_v12  ;;  %vm1356_vm15 = vcmp.eq.f32.partialorder %v1355_v51, 8.507059e+37  ;;  %v1124_v12 = vpop.f32.mrf.mxu0  ;;  %v3190_v51 = vld [vmem:[#allocation8 + $0x38] sm:$0xff] }
 0x181   :  { %v1163_v17 = vpop.f32.mrf.mxu1  ;;  %2046 = vmatpush.bf16.msra.mxu0 %v3190_v51 }
 0x182   :  { %v3244_v18 = vpop.eup %3243  ;;  %v2972_v19 = vmul.f32 -1.442695, %v1210_v33  ;;  %v1164_v26 = vadd.f32 %v1163_v17, %v1115_v24  ;;  %v1335_v27 = vadd.f32 %v3721_v0, %v1334_v20  ;;  %v1122_v24 = vadd.f32 %v1121_v46, %v1073_v13 }
 0x183   :  { %v3246_v21 = vpop.eup %3245  ;;  %v3735_v23 = vadd.f32 1.0, %v3244_v18 }
 0x184   :  { %3247 = vpow2.f32 %v2972_v19  ;;  %v1347_v48 = vmul.f32 %v3246_v21, %v3723_v1  ;;  %vm1352_vm10 = vweird.f32 %v3246_v21  ;;  %v1339_v34 = vsel %vm3750_vm11, %v3721_v0, %v1335_v27  ;;  %v1075_v1 = vpop.f32.mrf.mxu3 }
 0x185   :  { %3249 = vrcp.f32 %v3735_v23  ;;  %vm1353_vm14 = vmor %vm1351_vm12, %vm1352_vm10  ;;  %v1344_v57 = vsel %vm1341_vm13, %v1343_v44, %v1339_v34  ;;  %v1071_v0 = vadd.f32 %v3725_v60, %v3674_v29  ;;  %vm1366_vm1 = vweird.f32 %v3735_v23 }
 0x186   :  { %v1348_v28 = vsub.f32 1.0, %v1347_v48  ;;  %v1370_v18 = vand.u32 2147483647, %v3735_v23 }
 0x187   :  { %v1212_v30 = vpop.f32.mrf.mxu2  ;;  %v1120_v7 = vadd.f32 %v3732_v16, %v1071_v0  ;;  %v1372_v16 = vand.u32 2147483648, %v3735_v23 }
 0x188   :  { %v1213_v36 = vadd.f32 %v1212_v30, %v1164_v26  ;;  %v1349_v22 = vmul.f32 %v3246_v21, %v1348_v28  ;;  %vm1371_vm5 = vcmp.eq.f32.partialorder %v1370_v18, 8.507059e+37  ;;  %v1126_v45 = vpop.f32.mrf.mxu0 }
 0x189   :  { %v1165_v59 = vpop.f32.mrf.mxu1  ;;  %v1373_v31 = vor.u32 1.1754944e-38, %v1372_v16 }
 0x18a   :  { %v3248_v63 = vpop.eup %3247  ;;  %v2973_v39 = vmul.f32 -1.442695, %v1213_v36  ;;  %v1350_v49 = vadd.f32 %v3246_v21, %v1349_v22  ;;  %v1166_v58 = vadd.f32 %v1165_v59, %v1117_v38 }
 0x18b   :  { %v3758_v52 = vpop.eup %3249  ;;  %v3760_v47 = vadd.f32 1.0, %v3248_v63 }
 0x18c   :  { %v1362_v37 = vmul.f32 %v3758_v52, %v3735_v23  ;;  %3251 = vpow2.f32 %v2973_v39  ;;  %v1354_v55 = vsel %vm1353_vm14, %v3246_v21, %v1350_v49  ;;  %vm1367_vm0 = vweird.f32 %v3758_v52  ;;  %v1077_v26 = vpop.f32.mrf.mxu3 }
 0x18d   :  { %3253 = vrcp.f32 %v3760_v47  ;;  %v1359_v6 = vsel %vm1356_vm15, %v1358_v50, %v1354_v55  ;;  %v1387_v19 = vand.u32 2147483648, %v3760_v47  ;;  %v1385_v43 = vand.u32 2147483647, %v3760_v47  ;;  %vm3782_vm3 = vmor %vm1366_vm1, %vm1367_vm0 }
 0x18e   :  { %v1542_v14 = vpack.c.bf16 %v1359_v6, %v1344_v57  ;;  %v1363_v56 = vsub.f32 1.0, %v1362_v37  ;;  %vm1381_vm4 = vweird.f32 %v3760_v47  ;;  %v1076_v49 = vadd.f32 %v1075_v1, %v3680_v53 }
 0x18f   :  { %v1214_v61 = vpop.f32.mrf.mxu2  ;;  %v1388_v35 = vor.u32 1.1754944e-38, %v1387_v19  ;;  %vm1386_vm7 = vcmp.eq.f32.partialorder %v1385_v43, 8.507059e+37 }
 0x190   :  { %v1215_v32 = vadd.f32 %v1214_v61, %v1166_v58  ;;  %1630 = vmatmul.bf16.gmra.mxu3 %v1542_v14  ;;  %v1364_v5 = vmul.f32 %v3758_v52, %v1363_v56  ;;  %v1125_v6 = vadd.f32 %v1124_v12, %v1076_v49  ;;  %v1078_v56 = vadd.f32 %v1077_v26, %v3683_v2 }
 0x191   :  { %v1168_v3 = vpop.f32.mrf.mxu1 }
 0x192   :  { %v3252_v4 = vpop.eup %3251  ;;  %v2974_v25 = vmul.f32 -1.442695, %v1215_v32  ;;  %v1169_v29 = vadd.f32 %v1168_v3, %v1120_v7  ;;  %v1365_v60 = vadd.f32 %v3758_v52, %v1364_v5  ;;  %v1127_v7 = vadd.f32 %v1126_v45, %v1078_v56 }
 0x193   :  { %v3254_v8 = vpop.eup %3253  ;;  %v3769_v9 = vadd.f32 1.0, %v3252_v4 }
 0x194   :  { %v1377_v41 = vmul.f32 %v3254_v8, %v3760_v47  ;;  %3255 = vpow2.f32 %v2974_v25  ;;  %vm1382_vm2 = vweird.f32 %v3254_v8  ;;  %v1369_v23 = vsel %vm3782_vm3, %v3758_v52, %v1365_v60  ;;  %v1080_v58 = vpop.f32.mrf.mxu3  ;;  %v1129_v25 = vpop.f32.mrf.mxu0 }
 0x195   :  { %3257 = vrcp.f32 %v3769_v9  ;;  %vm1383_vm6 = vmor %vm1381_vm4, %vm1382_vm2  ;;  %v1374_v38 = vsel %vm1371_vm5, %v1373_v31, %v1369_v23  ;;  %vm1396_vm9 = vweird.f32 %v3769_v9  ;;  %v1400_v32 = vand.u32 2147483647, %v3769_v9 }
 0x196   :  { %v1378_v33 = vsub.f32 1.0, %v1377_v41  ;;  %v1402_v3 = vand.u32 2147483648, %v3769_v9  ;;  %v1081_v23 = vadd.f32 %v1080_v58, %v3688_v11 }
 0x197   :  { %v1217_v17 = vpop.f32.mrf.mxu2  ;;  %vm1401_vm13 = vcmp.eq.f32.partialorder %v1400_v32, 8.507059e+37 }
 0x198   :  { %v1218_v20 = vadd.f32 %v1217_v17, %v1169_v29  ;;  %v1379_v21 = vmul.f32 %v3254_v8, %v1378_v33  ;;  %v1403_v18 = vor.u32 1.1754944e-38, %v1402_v3 }
 0x199   :  { %v1170_v48 = vpop.f32.mrf.mxu1 }
 0x19a   :  { %v3256_v10 = vpop.eup %3255  ;;  %v2975_v27 = vmul.f32 -1.442695, %v1218_v20  ;;  %v1380_v28 = vadd.f32 %v3254_v8, %v1379_v21  ;;  %v1171_v63 = vadd.f32 %v1170_v48, %v1122_v24  ;;  %v3189_v21 = vld [vmem:[#allocation8 + $0x30] sm:$0xff] }
 0x19b   :  { %v3790_v30 = vpop.eup %3257  ;;  %v3792_v54 = vadd.f32 1.0, %v3256_v10  ;;  %2047 = vmatpush.bf16.msra.mxu0 %v3189_v21 }
 0x19c   :  { %v1392_v36 = vmul.f32 %v3790_v30, %v3769_v9  ;;  %3259 = vpow2.f32 %v2975_v27  ;;  %v1384_v22 = vsel %vm1383_vm6, %v3254_v8, %v1380_v28  ;;  %vm1397_vm8 = vweird.f32 %v3790_v30  ;;  %v1082_v48 = vpop.f32.mrf.mxu3  ;;  %v1131_v31 = vpop.f32.mrf.mxu0 }
 0x19d   :  { %3261 = vrcp.f32 %v3792_v54  ;;  %v1389_v59 = vsel %vm1386_vm7, %v1388_v35, %v1384_v22  ;;  %v1417_v4 = vand.u32 2147483648, %v3792_v54  ;;  %v1415_v8 = vand.u32 2147483647, %v3792_v54  ;;  %vm3812_vm11 = vmor %vm1396_vm9, %vm1397_vm8 }
 0x19e   :  { %v1543_v46 = vpack.c.bf16 %v1389_v59, %v1374_v38  ;;  %v1393_v39 = vsub.f32 1.0, %v1392_v36  ;;  %vm1411_vm12 = vweird.f32 %v3792_v54  ;;  %v1130_v38 = vadd.f32 %v1129_v25, %v1081_v23  ;;  %v3188_v25 = vld [vmem:[#allocation8 + $0x28] sm:$0xff] }
 0x19f   :  { %v1219_v34 = vpop.f32.mrf.mxu2  ;;  %v1418_v16 = vor.u32 1.1754944e-38, %v1417_v4  ;;  %vm1416_vm15 = vcmp.eq.f32.partialorder %v1415_v8, 8.507059e+37  ;;  %v1083_v45 = vadd.f32 %v1082_v48, %v3690_v42  ;;  %2048 = vmatpush.bf16.msra.mxu0 %v3188_v25 }
 0x1a0   :  { %v1220_v52 = vadd.f32 %v1219_v34, %v1171_v63  ;;  %1635 = vmatmul.bf16.gmra.mxu3 %v1543_v46  ;;  %v1394_v37 = vmul.f32 %v3790_v30, %v1393_v39 }
 0x1a1   :  { %v1173_v47 = vpop.f32.mrf.mxu1 }
 0x1a2   :  { %v3260_v44 = vpop.eup %3259  ;;  %v2976_v50 = vmul.f32 -1.442695, %v1220_v52  ;;  %v1174_v53 = vadd.f32 %v1173_v47, %v1125_v6  ;;  %v1395_v61 = vadd.f32 %v3790_v30, %v1394_v37  ;;  %v1132_v37 = vadd.f32 %v1131_v31, %v1083_v45  ;;  %v3185_v6 = vld [vmem:[#allocation8 + $0x10] sm:$0xff] }
 0x1a3   :  { %v3262_v55 = vpop.eup %3261  ;;  %v3800_v57 = vadd.f32 1.0, %v3260_v44 }
 0x1a4   :  { %v1407_v14 = vmul.f32 %v3262_v55, %v3792_v54  ;;  %3263 = vpow2.f32 %v2976_v50  ;;  %vm1412_vm10 = vweird.f32 %v3262_v55  ;;  %v1399_v9 = vsel %vm3812_vm11, %v3790_v30, %v1395_v61  ;;  %v1085_v47 = vpop.f32.mrf.mxu3  ;;  %v1134_v32 = vpop.f32.mrf.mxu0 }
 0x1a5   :  { %3265 = vrcp.f32 %v3800_v57  ;;  %vm1413_vm14 = vmor %vm1411_vm12, %vm1412_vm10  ;;  %v1404_v43 = vsel %vm1401_vm13, %v1403_v18, %v1399_v9  ;;  %vm1426_vm1 = vweird.f32 %v3800_v57  ;;  %v1430_v34 = vand.u32 2147483647, %v3800_v57 }
 0x1a6   :  { %v1408_v0 = vsub.f32 1.0, %v1407_v14  ;;  %v1432_v49 = vand.u32 2147483648, %v3800_v57 }
 0x1a7   :  { %v1222_v1 = vpop.f32.mrf.mxu2  ;;  %vm1431_vm5 = vcmp.eq.f32.partialorder %v1430_v34, 8.507059e+37 }
 0x1a8   :  { %v1223_v5 = vadd.f32 %v1222_v1, %v1174_v53  ;;  %v1409_v2 = vmul.f32 %v3262_v55, %v1408_v0  ;;  %v1433_v0 = vor.u32 1.1754944e-38, %v1432_v49 }
 0x1a9   :  { %v1175_v12 = vpop.f32.mrf.mxu1 }
 0x1aa   :  { %v3264_v13 = vpop.eup %3263  ;;  %v2977_v29 = vmul.f32 -1.442695, %v1223_v5  ;;  %v1410_v60 = vadd.f32 %v3262_v55, %v1409_v2  ;;  %v1176_v15 = vadd.f32 %v1175_v12, %v1127_v7 }
 0x1ab   :  { %v3820_v33 = vpop.eup %3265  ;;  %v3822_v17 = vadd.f32 1.0, %v3264_v13  ;;  %v1086_v13 = vadd.f32 %v1085_v47, %v3694_v62 }
 0x1ac   :  { %v1422_v19 = vmul.f32 %v3820_v33, %v3800_v57  ;;  %3267 = vpow2.f32 %v2977_v29  ;;  %v1414_v20 = vsel %vm1413_vm14, %v3262_v55, %v1410_v60  ;;  %vm1427_vm0 = vweird.f32 %v3820_v33  ;;  %v1136_v62 = vpop.f32.mrf.mxu0 }
 0x1ad   :  { %3269 = vrcp.f32 %v3822_v17  ;;  %v1419_v24 = vsel %vm1416_vm15, %v1418_v16, %v1414_v20  ;;  %v1447_v52 = vand.u32 2147483648, %v3822_v17  ;;  %v1445_v50 = vand.u32 2147483647, %v3822_v17  ;;  %vm3841_vm3 = vmor %vm1426_vm1, %vm1427_vm0 }
 0x1ae   :  { %v1544_v10 = vpack.c.bf16 %v1419_v24, %v1404_v43  ;;  %v1423_v26 = vsub.f32 1.0, %v1422_v19  ;;  %vm1441_vm4 = vweird.f32 %v3822_v17  ;;  %v1135_v20 = vadd.f32 %v1134_v32, %v1086_v13  ;;  %v3187_v43 = vld [vmem:[#allocation8 + $0x20] sm:$0xff] }
 0x1af   :  { %v1224_v27 = vpop.f32.mrf.mxu2  ;;  %v1448_v1 = vor.u32 1.1754944e-38, %v1447_v52  ;;  %vm1446_vm7 = vcmp.eq.f32.partialorder %v1445_v50, 8.507059e+37  ;;  %2049 = vmatpush.bf16.msra.mxu0 %v3187_v43 }
 0x1b0   :  { %v1225_v28 = vadd.f32 %v1224_v27, %v1176_v15  ;;  %1640 = vmatmul.bf16.gmra.mxu3 %v1544_v10  ;;  %v1424_v36 = vmul.f32 %v3820_v33, %v1423_v26  ;;  %v3186_v26 = vld [vmem:[#allocation8 + $0x18] sm:$0xff] }
 0x1b1   :  { %v1178_v30 = vpop.f32.mrf.mxu1 }
 0x1b2   :  { %v3268_v54 = vpop.eup %3267  ;;  %v2978_v35 = vmul.f32 -1.442695, %v1225_v28  ;;  %v1179_v11 = vadd.f32 %v1178_v30, %v1130_v38  ;;  %v1425_v63 = vadd.f32 %v3820_v33, %v1424_v36 }
 0x1b3   :  { %v3270_v22 = vpop.eup %3269  ;;  %v3829_v51 = vadd.f32 1.0, %v3268_v54  ;;  %2050 = vmatpush.bf16.msra.mxu0 %v3186_v26 }
 0x1b4   :  { %v1437_v59 = vmul.f32 %v3270_v22, %v3822_v17  ;;  %3271 = vpow2.f32 %v2978_v35  ;;  %vm1442_vm2 = vweird.f32 %v3270_v22  ;;  %v1429_v57 = vsel %vm3841_vm3, %v3820_v33, %v1425_v63  ;;  %v1087_v33 = vpop.f32.mrf.mxu3 }
 0x1b5   :  { %3273 = vrcp.f32 %v3829_v51  ;;  %vm1443_vm6 = vmor %vm1441_vm4, %vm1442_vm2  ;;  %v1434_v5 = vsel %vm1431_vm5, %v1433_v0, %v1429_v57  ;;  %v1088_v24 = vadd.f32 %v1087_v33, %v3697_v40  ;;  %vm1456_vm9 = vweird.f32 %v3829_v51 }
 0x1b6   :  { %v1438_v46 = vsub.f32 1.0, %v1437_v59  ;;  %v1460_v23 = vand.u32 2147483647, %v3829_v51  ;;  %v1462_v28 = vand.u32 2147483648, %v3829_v51 }
 0x1b7   :  { %v1227_v39 = vpop.f32.mrf.mxu2  ;;  %v1137_v35 = vadd.f32 %v1136_v62, %v1088_v24  ;;  %2051 = vmatpush.bf16.msra.mxu0 %v3185_v6 }
 0x1b8   :  { %v1228_v44 = vadd.f32 %v1227_v39, %v1179_v11  ;;  %v1439_v42 = vmul.f32 %v3270_v22, %v1438_v46  ;;  %vm1461_vm13 = vcmp.eq.f32.partialorder %v1460_v23, 8.507059e+37  ;;  %v1463_v46 = vor.u32 1.1754944e-38, %v1462_v28 }
 0x1b9   :  { %v1180_v55 = vpop.f32.mrf.mxu1 }
 0x1ba   :  { %v3272_v58 = vpop.eup %3271  ;;  %v2979_v14 = vmul.f32 -1.442695, %v1228_v44  ;;  %v1440_v56 = vadd.f32 %v3270_v22, %v1439_v42  ;;  %v1181_v8 = vadd.f32 %v1180_v55, %v1132_v37 }
 0x1bb   :  { %v3849_v53 = vpop.eup %3273  ;;  %v3851_v61 = vadd.f32 1.0, %v3272_v58 }
 0x1bc   :  { %v1452_v3 = vmul.f32 %v3849_v53, %v3829_v51  ;;  %3275 = vpow2.f32 %v2979_v14  ;;  %v1444_v4 = vsel %vm1443_vm6, %v3270_v22, %v1440_v56  ;;  %vm1457_vm8 = vweird.f32 %v3849_v53 }
 0x1bd   :  { %3277 = vrcp.f32 %v3851_v61  ;;  %v1449_v2 = vsel %vm1446_vm7, %v1448_v1, %v1444_v4  ;;  %v1477_v40 = vand.u32 2147483648, %v3851_v61  ;;  %v1475_v31 = vand.u32 2147483647, %v3851_v61  ;;  %vm3870_vm11 = vmor %vm1456_vm9, %vm1457_vm8 }
 0x1be   :  { %v1545_v7 = vpack.c.bf16 %v1449_v2, %v1434_v5  ;;  %v1453_v12 = vsub.f32 1.0, %v1452_v3  ;;  %vm1471_vm12 = vweird.f32 %v3851_v61 }
 0x1bf   :  { %v1229_v41 = vpop.f32.mrf.mxu2  ;;  %v1478_v39 = vor.u32 1.1754944e-38, %v1477_v40  ;;  %vm1476_vm15 = vcmp.eq.f32.partialorder %v1475_v31, 8.507059e+37 }
 0x1c0   :  { %v1230_v29 = vadd.f32 %v1229_v41, %v1181_v8  ;;  %1645 = vmatmul.bf16.gmra.mxu3 %v1545_v7  ;;  %v1454_v18 = vmul.f32 %v3849_v53, %v1453_v12 }
 0x1c1   :  { %v1183_v9 = vpop.f32.mrf.mxu1 }
 0x1c2   :  { %v3276_v60 = vpop.eup %3275  ;;  %v2980_v17 = vmul.f32 -1.442695, %v1230_v29  ;;  %v1184_v48 = vadd.f32 %v1183_v9, %v1135_v20  ;;  %v1455_v15 = vadd.f32 %v3849_v53, %v1454_v18 }
 0x1c3   :  { %v3278_v16 = vpop.eup %3277  ;;  %v3858_v19 = vadd.f32 1.0, %v3276_v60 }
 0x1c4   :  { %v1467_v21 = vmul.f32 %v3278_v16, %v3851_v61  ;;  %3279 = vpow2.f32 %v2980_v17  ;;  %vm1472_vm10 = vweird.f32 %v3278_v16  ;;  %v1459_v59 = vsel %vm3870_vm11, %v3849_v53, %v1455_v15 }
 0x1c5   :  { %3281 = vrcp.f32 %v3858_v19  ;;  %vm1473_vm14 = vmor %vm1471_vm12, %vm1472_vm10  ;;  %v1464_v52 = vsel %vm1461_vm13, %v1463_v46, %v1459_v59  ;;  %vm1486_vm1 = vweird.f32 %v3858_v19  ;;  %v1492_v32 = vand.u32 2147483648, %v3858_v19 }
 0x1c6   :  { %v1468_v10 = vsub.f32 1.0, %v1467_v21  ;;  %v1490_v4 = vand.u32 2147483647, %v3858_v19 }
 0x1c7   :  { %v1232_v27 = vpop.f32.mrf.mxu2  ;;  %v1493_v29 = vor.u32 1.1754944e-38, %v1492_v32 }
 0x1c8   :  { %v1233_v30 = vadd.f32 %v1232_v27, %v1184_v48  ;;  %v1469_v54 = vmul.f32 %v3278_v16, %v1468_v10  ;;  %vm1491_vm6 = vcmp.eq.f32.partialorder %v1490_v4, 8.507059e+37 }
 0x1c9   :  { %v1185_v63 = vpop.f32.mrf.mxu1 }
 0x1ca   :  { %v3280_v22 = vpop.eup %3279  ;;  %v2981_v38 = vmul.f32 -1.442695, %v1233_v30  ;;  %v1470_v45 = vadd.f32 %v3278_v16, %v1469_v54  ;;  %v1186_v44 = vadd.f32 %v1185_v63, %v1137_v35 }
 0x1cb   :  { %v3282_v51 = vpop.eup %3281  ;;  %v1298_v11 = vadd.f32 1.0, %v3280_v22  ;;  %v3892_v22 = vld [vmem:[%s4213_s4] ss:$0 sm:$0xff] }
 0x1cc   :  { %v1482_v34 = vmul.f32 %v3282_v51, %v3858_v19  ;;  %3283 = vpow2.f32 %v2981_v38  ;;  %v1474_v49 = vsel %vm1473_vm14, %v3278_v16, %v1470_v45  ;;  %vm1487_vm0 = vweird.f32 %v3282_v51  ;;  %v3184_v38 = vld [vmem:[#allocation8 + $0x8] sm:$0xff] }
 0x1cd   :  { %3285 = vrcp.f32 %v1298_v11  ;;  %v1479_v47 = vsel %vm1476_vm15, %v1478_v39, %v1474_v49  ;;  %v1507_v3 = vand.u32 2147483648, %v1298_v11  ;;  %v1505_v5 = vand.u32 2147483647, %v1298_v11  ;;  %vm3883_vm3 = vmor %vm1486_vm1, %vm1487_vm0  ;;  %2052 = vmatpush.bf16.msra.mxu0 %v3184_v38 }
 0x1ce   :  { %v1546_v42 = vpack.c.bf16 %v1479_v47, %v1464_v52  ;;  %v1483_v50 = vsub.f32 1.0, %v1482_v34  ;;  %vm1501_vm4 = vweird.f32 %v1298_v11 }
 0x1cf   :  { %v1234_v37 = vpop.f32.mrf.mxu2  ;;  %v1508_v9 = vor.u32 1.1754944e-38, %v1507_v3  ;;  %vm1506_vm7 = vcmp.eq.f32.partialorder %v1505_v5, 8.507059e+37 }
 0x1d0   :  { %v1235_v55 = vadd.f32 %v1234_v37, %v1186_v44  ;;  %1650 = vmatmul.bf16.gmra.mxu3 %v1546_v42  ;;  %v1484_v57 = vmul.f32 %v3282_v51, %v1483_v50 }
 0x1d2   :  { %v3284_v58 = vpop.eup %3283  ;;  %v2982_v14 = vmul.f32 -1.442695, %v1235_v55  ;;  %v1485_v0 = vadd.f32 %v3282_v51, %v1484_v57 }
 0x1d3   :  { %v3286_v56 = vpop.eup %3285  ;;  %v1299_v53 = vadd.f32 1.0, %v3284_v58 }
 0x1d4   :  { %v1497_v61 = vmul.f32 %v3286_v56, %v1298_v11  ;;  %3287 = vpow2.f32 %v2982_v14  ;;  %vm1502_vm2 = vweird.f32 %v3286_v56  ;;  %v1489_v7 = vsel %vm3883_vm3, %v3282_v51, %v1485_v0  ;;  %v3183_v11 = vld [vmem:[#allocation8] sm:$0xff] }
 0x1d5   :  { %3289 = vrcp.f32 %v1299_v53  ;;  %vm1503_vm5 = vmor %vm1501_vm4, %vm1502_vm2  ;;  %v1494_v17 = vsel %vm1491_vm6, %v1493_v29, %v1489_v7  ;;  %vm1516_vm9 = vweird.f32 %v1299_v53  ;;  %v1522_v48 = vand.u32 2147483648, %v1299_v53  ;;  %2053 = vmatpush.bf16.msra.mxu0 %v3183_v11 }
 0x1d6   :  { %v1498_v1 = vsub.f32 1.0, %v1497_v61  ;;  %v1520_v10 = vand.u32 2147483647, %v1299_v53 }
 0x1d7   :  { %v1523_v40 = vor.u32 1.1754944e-38, %v1522_v48 }
 0x1d8   :  { %v1499_v25 = vmul.f32 %v3286_v56, %v1498_v1  ;;  %vm1521_vm14 = vcmp.eq.f32.partialorder %v1520_v10, 8.507059e+37 }
 0x1da   :  { %v3288_v8 = vpop.eup %3287  ;;  %v1500_v12 = vadd.f32 %v3286_v56, %v1499_v25 }
 0x1db   :  { %v3290_v41 = vpop.eup %3289  ;;  %v1300_v13 = vadd.f32 1.0, %v3288_v8 }
 0x1dc   :  { %v1512_v60 = vmul.f32 %v3290_v41, %v1299_v53  ;;  %v1504_v33 = vsel %vm1503_vm5, %v3286_v56, %v1500_v12  ;;  %vm1517_vm8 = vweird.f32 %v3290_v41 }
 0x1dd   :  { %3291 = vrcp.f32 %v1300_v13  ;;  %v1509_v18 = vsel %vm1506_vm7, %v1508_v9, %v1504_v33  ;;  %v1537_v15 = vand.u32 2147483648, %v1300_v13  ;;  %v1535_v27 = vand.u32 2147483647, %v1300_v13  ;;  %vm1518_vm11 = vmor %vm1516_vm9, %vm1517_vm8 }
 0x1de   :  { %v1547_v16 = vpack.c.bf16 %v1509_v18, %v1494_v17  ;;  %v1513_v19 = vsub.f32 1.0, %v1512_v60  ;;  %vm1531_vm12 = vweird.f32 %v1300_v13 }
 0x1df   :  { %v1538_v30 = vor.u32 1.1754944e-38, %v1537_v15  ;;  %vm1536_vm15 = vcmp.eq.f32.partialorder %v1535_v27, 8.507059e+37 }
 0x1e0   :  { %1655 = vmatmul.bf16.gmra.mxu3 %v1547_v16  ;;  %v1514_v20 = vmul.f32 %v3290_v41, %v1513_v19 }
 0x1e2   :  { %v1515_v24 = vadd.f32 %v3290_v41, %v1514_v20 }
 0x1e3   :  { %v3292_v21 = vpop.eup %3291 }
 0x1e4   :  { %v1527_v43 = vmul.f32 %v3292_v21, %v1300_v13  ;;  %vm1532_vm10 = vweird.f32 %v3292_v21  ;;  %v1519_v23 = vsel %vm1518_vm11, %v3290_v41, %v1515_v24 }
 0x1e5   :  { %vm1533_vm13 = vmor %vm1531_vm12, %vm1532_vm10  ;;  %v1524_v31 = vsel %vm1521_vm14, %v1523_v40, %v1519_v23 }
 0x1e6   :  { %v1528_v62 = vsub.f32 1.0, %v1527_v43 }
 0x1e8   :  { %v1529_v26 = vmul.f32 %v3292_v21, %v1528_v62 }
 0x1ea   :  { %v1530_v28 = vadd.f32 %v3292_v21, %v1529_v26 }
 0x1ec   :  { %v1534_v54 = vsel %vm1533_vm13, %v3292_v21, %v1530_v28 }
 0x1ed   :  { %v1539_v35 = vsel %vm1536_vm15, %v1538_v30, %v1534_v54 }
 0x1ee   :  { %v1548_v36 = vpack.c.bf16 %v1539_v35, %v1524_v31 }
 0x1f0   :  { %1660 = vmatmul.bf16.gmra.mxu3 %v1548_v36 }
 0x203   :  { %v1626_v59 = vpop.f32.mrf.mxu3 }
 0x204   :  { %v1627_v45 = vadd.f32 %v3892_v22, %v1626_v59 }
 0x206   :  { %v3015_v51 = vmul.f32 -1.442695, %v1627_v45 }
 0x208   :  { %3293 = vpow2.f32 %v3015_v51 }
 0x20b   :  { %v1628_v63 = vpop.f32.mrf.mxu3 }
 0x20c   :  { %v1629_v46 = vadd.f32 %v3892_v22, %v1628_v63 }
 0x20e   :  { %v3294_v39 = vpop.eup %3293  ;;  %v3016_v34 = vmul.f32 -1.442695, %v1629_v46 }
 0x20f   :  { %v1714_v49 = vadd.f32 1.0, %v3294_v39 }
 0x210   :  { %3295 = vpow2.f32 %v3016_v34 }
 0x211   :  { %3297 = vrcp.f32 %v1714_v49  ;;  %vm1735_vm1 = vweird.f32 %v1714_v49  ;;  %v1739_v25 = vand.u32 2147483647, %v1714_v49  ;;  %v1741_v5 = vand.u32 2147483648, %v1714_v49 }
 0x213   :  { %v1631_v52 = vpop.f32.mrf.mxu3  ;;  %vm1740_vm5 = vcmp.eq.f32.partialorder %v1739_v25, 8.507059e+37  ;;  %v1742_v18 = vor.u32 1.1754944e-38, %v1741_v5 }
 0x214   :  { %v1632_v47 = vadd.f32 %v3892_v22, %v1631_v52 }
 0x216   :  { %v3296_v44 = vpop.eup %3295  ;;  %v3017_v42 = vmul.f32 -1.442695, %v1632_v47 }
 0x217   :  { %v3298_v50 = vpop.eup %3297  ;;  %v1715_v37 = vadd.f32 1.0, %v3296_v44 }
 0x218   :  { %v1731_v55 = vmul.f32 %v3298_v50, %v1714_v49  ;;  %3299 = vpow2.f32 %v3017_v42  ;;  %vm1736_vm0 = vweird.f32 %v3298_v50 }
 0x219   :  { %3301 = vrcp.f32 %v1715_v37  ;;  %v1756_v2 = vand.u32 2147483648, %v1715_v37  ;;  %v1754_v12 = vand.u32 2147483647, %v1715_v37  ;;  %vm3902_vm3 = vmor %vm1735_vm1, %vm1736_vm0  ;;  %vm1750_vm4 = vweird.f32 %v1715_v37 }
 0x21a   :  { %v1732_v6 = vsub.f32 1.0, %v1731_v55 }
 0x21b   :  { %v1633_v58 = vpop.f32.mrf.mxu3  ;;  %v1757_v16 = vor.u32 1.1754944e-38, %v1756_v2  ;;  %vm1755_vm7 = vcmp.eq.f32.partialorder %v1754_v12, 8.507059e+37 }
 0x21c   :  { %v1634_v14 = vadd.f32 %v3892_v22, %v1633_v58  ;;  %v1733_v53 = vmul.f32 %v3298_v50, %v1732_v6 }
 0x21e   :  { %v3300_v57 = vpop.eup %3299  ;;  %v3018_v56 = vmul.f32 -1.442695, %v1634_v14  ;;  %v1734_v3 = vadd.f32 %v3298_v50, %v1733_v53 }
 0x21f   :  { %v3302_v61 = vpop.eup %3301  ;;  %v3898_v0 = vadd.f32 1.0, %v3300_v57 }
 0x220   :  { %v1746_v1 = vmul.f32 %v3302_v61, %v1715_v37  ;;  %3303 = vpow2.f32 %v3018_v56  ;;  %vm1751_vm2 = vweird.f32 %v3302_v61  ;;  %v1738_v9 = vsel %vm3902_vm3, %v3298_v50, %v1734_v3 }
 0x221   :  { %3305 = vrcp.f32 %v3898_v0  ;;  %vm1752_vm6 = vmor %vm1750_vm4, %vm1751_vm2  ;;  %v1743_v21 = vsel %vm1740_vm5, %v1742_v18, %v1738_v9  ;;  %vm1765_vm9 = vweird.f32 %v3898_v0  ;;  %v1769_v35 = vand.u32 2147483647, %v3898_v0 }
 0x222   :  { %v1747_v32 = vsub.f32 1.0, %v1746_v1  ;;  %v1771_v36 = vand.u32 2147483648, %v3898_v0 }
 0x223   :  { %v1636_v4 = vpop.f32.mrf.mxu3  ;;  %vm1770_vm13 = vcmp.eq.f32.partialorder %v1769_v35, 8.507059e+37 }
 0x224   :  { %v1637_v8 = vadd.f32 %v3892_v22, %v1636_v4  ;;  %v1748_v7 = vmul.f32 %v3302_v61, %v1747_v32  ;;  %v1772_v47 = vor.u32 1.1754944e-38, %v1771_v36 }
 0x226   :  { %v3304_v13 = vpop.eup %3303  ;;  %v3019_v29 = vmul.f32 -1.442695, %v1637_v8  ;;  %v1749_v60 = vadd.f32 %v3302_v61, %v1748_v7 }
 0x227   :  { %v3306_v33 = vpop.eup %3305  ;;  %v1717_v17 = vadd.f32 1.0, %v3304_v13 }
 0x228   :  { %3307 = vpow2.f32 %v3019_v29  ;;  %v1753_v19 = vsel %vm1752_vm6, %v3302_v61, %v1749_v60  ;;  %v1761_v20 = vmul.f32 %v3306_v33, %v3898_v0  ;;  %vm1766_vm8 = vweird.f32 %v3306_v33 }
 0x229   :  { %3309 = vrcp.f32 %v1717_v17  ;;  %v1758_v43 = vsel %vm1755_vm7, %v1757_v16, %v1753_v19  ;;  %v1786_v38 = vand.u32 2147483648, %v1717_v17  ;;  %v1784_v51 = vand.u32 2147483647, %v1717_v17  ;;  %vm3917_vm11 = vmor %vm1765_vm9, %vm1766_vm8 }
 0x22a   :  { %v1970_v24 = vpack.c.bf16 %v1758_v43, %v1743_v21  ;;  %v1762_v62 = vsub.f32 1.0, %v1761_v20  ;;  %vm1780_vm12 = vweird.f32 %v1717_v17 }
 0x22b   :  { %v1638_v48 = vpop.f32.mrf.mxu3  ;;  %v1787_v44 = vor.u32 1.1754944e-38, %v1786_v38  ;;  %vm1785_vm15 = vcmp.eq.f32.partialorder %v1784_v51, 8.507059e+37 }
 0x22c   :  { %v1639_v15 = vadd.f32 %v3892_v22, %v1638_v48  ;;  %2054 = vmatmul.bf16.vlgmr.msra.gmra.mxu0 %v1970_v24  ;;  %v1763_v27 = vmul.f32 %v3306_v33, %v1762_v62 }
 0x22e   :  { %v3308_v10 = vpop.eup %3307  ;;  %v3020_v26 = vmul.f32 -1.442695, %v1639_v15  ;;  %v1764_v30 = vadd.f32 %v3306_v33, %v1763_v27 }
 0x22f   :  { %v3310_v23 = vpop.eup %3309  ;;  %v3910_v28 = vadd.f32 1.0, %v3308_v10 }
 0x230   :  { %3311 = vpow2.f32 %v3020_v26  ;;  %v1776_v40 = vmul.f32 %v3310_v23, %v1717_v17  ;;  %vm1781_vm10 = vweird.f32 %v3310_v23  ;;  %v1768_v39 = vsel %vm3917_vm11, %v3306_v33, %v1764_v30 }
 0x231   :  { %3313 = vrcp.f32 %v3910_v28  ;;  %vm1782_vm14 = vmor %vm1780_vm12, %vm1781_vm10  ;;  %v1773_v37 = vsel %vm1770_vm13, %v1772_v47, %v1768_v39  ;;  %vm1795_vm1 = vweird.f32 %v3910_v28  ;;  %v1799_v5 = vand.u32 2147483647, %v3910_v28 }
 0x232   :  { %v1777_v54 = vsub.f32 1.0, %v1776_v40  ;;  %v1801_v2 = vand.u32 2147483648, %v3910_v28 }
 0x233   :  { %v1641_v31 = vpop.f32.mrf.mxu3  ;;  %vm1800_vm5 = vcmp.eq.f32.partialorder %v1799_v5, 8.507059e+37 }
 0x234   :  { %v1642_v59 = vadd.f32 %v3892_v22, %v1641_v31  ;;  %v1778_v45 = vmul.f32 %v3310_v23, %v1777_v54  ;;  %v1802_v16 = vor.u32 1.1754944e-38, %v1801_v2 }
 0x236   :  { %v3312_v63 = vpop.eup %3311  ;;  %v3021_v46 = vmul.f32 -1.442695, %v1642_v59  ;;  %v1779_v34 = vadd.f32 %v3310_v23, %v1778_v45 }
 0x237   :  { %v3314_v49 = vpop.eup %3313  ;;  %v1719_v52 = vadd.f32 1.0, %v3312_v63 }
 0x238   :  { %v1791_v42 = vmul.f32 %v3314_v49, %v3910_v28  ;;  %3315 = vpow2.f32 %v3021_v46  ;;  %v1783_v50 = vsel %vm1782_vm14, %v3310_v23, %v1779_v34  ;;  %vm1796_vm0 = vweird.f32 %v3314_v49 }
 0x239   :  { %3317 = vrcp.f32 %v1719_v52  ;;  %v1788_v55 = vsel %vm1785_vm15, %v1787_v44, %v1783_v50  ;;  %v1816_v8 = vand.u32 2147483648, %v1719_v52  ;;  %v1814_v41 = vand.u32 2147483647, %v1719_v52  ;;  %vm3932_vm3 = vmor %vm1795_vm1, %vm1796_vm0 }
 0x23a   :  { %v1971_v6 = vpack.c.bf16 %v1788_v55, %v1773_v37  ;;  %v1792_v58 = vsub.f32 1.0, %v1791_v42  ;;  %vm1810_vm4 = vweird.f32 %v1719_v52 }
 0x23b   :  { %v1643_v14 = vpop.f32.mrf.mxu3  ;;  %v1817_v19 = vor.u32 1.1754944e-38, %v1816_v8  ;;  %vm1815_vm7 = vcmp.eq.f32.partialorder %v1814_v41, 8.507059e+37 }
 0x23c   :  { %v1644_v57 = vadd.f32 %v3892_v22, %v1643_v14  ;;  %2059 = vmatmul.bf16.gmra.mxu0 %v1971_v6  ;;  %v1793_v61 = vmul.f32 %v3314_v49, %v1792_v58 }
 0x23e   :  { %v3316_v56 = vpop.eup %3315  ;;  %v3022_v53 = vmul.f32 -1.442695, %v1644_v57  ;;  %v1794_v3 = vadd.f32 %v3314_v49, %v1793_v61 }
 0x23f   :  { %v3318_v0 = vpop.eup %3317  ;;  %v3925_v1 = vadd.f32 1.0, %v3316_v56 }
 0x240   :  { %v1806_v32 = vmul.f32 %v3318_v0, %v1719_v52  ;;  %3319 = vpow2.f32 %v3022_v53  ;;  %vm1811_vm2 = vweird.f32 %v3318_v0  ;;  %v1798_v60 = vsel %vm3932_vm3, %v3314_v49, %v1794_v3 }
 0x241   :  { %3321 = vrcp.f32 %v3925_v1  ;;  %vm1812_vm6 = vmor %vm1810_vm4, %vm1811_vm2  ;;  %v1803_v43 = vsel %vm1800_vm5, %v1802_v16, %v1798_v60  ;;  %vm1825_vm9 = vweird.f32 %v3925_v1  ;;  %v1829_v36 = vand.u32 2147483647, %v3925_v1 }
 0x242   :  { %v1807_v4 = vsub.f32 1.0, %v1806_v32  ;;  %v1831_v38 = vand.u32 2147483648, %v3925_v1 }
 0x243   :  { %v1646_v25 = vpop.f32.mrf.mxu3  ;;  %vm1830_vm13 = vcmp.eq.f32.partialorder %v1829_v36, 8.507059e+37 }
 0x244   :  { %v1647_v7 = vadd.f32 %v3892_v22, %v1646_v25  ;;  %v1808_v12 = vmul.f32 %v3318_v0, %v1807_v4  ;;  %v1832_v44 = vor.u32 1.1754944e-38, %v1831_v38 }
 0x246   :  { %v3320_v29 = vpop.eup %3319  ;;  %v3023_v9 = vmul.f32 -1.442695, %v1647_v7  ;;  %v1809_v33 = vadd.f32 %v3318_v0, %v1808_v12 }
 0x247   :  { %v3322_v17 = vpop.eup %3321  ;;  %v1721_v18 = vadd.f32 1.0, %v3320_v29 }
 0x248   :  { %v1821_v20 = vmul.f32 %v3322_v17, %v3925_v1  ;;  %3323 = vpow2.f32 %v3023_v9  ;;  %v1813_v21 = vsel %vm1812_vm6, %v3318_v0, %v1809_v33  ;;  %vm1826_vm8 = vweird.f32 %v3322_v17 }
 0x249   :  { %3325 = vrcp.f32 %v1721_v18  ;;  %v1818_v24 = vsel %vm1815_vm7, %v1817_v19, %v1813_v21  ;;  %v1846_v59 = vand.u32 2147483648, %v1721_v18  ;;  %v1844_v11 = vand.u32 2147483647, %v1721_v18  ;;  %vm3947_vm11 = vmor %vm1825_vm9, %vm1826_vm8 }
 0x24a   :  { %v1972_v62 = vpack.c.bf16 %v1818_v24, %v1803_v43  ;;  %v1822_v48 = vsub.f32 1.0, %v1821_v20  ;;  %vm1840_vm12 = vweird.f32 %v1721_v18 }
 0x24b   :  { %v1648_v15 = vpop.f32.mrf.mxu3  ;;  %v1847_v42 = vor.u32 1.1754944e-38, %v1846_v59  ;;  %vm1845_vm15 = vcmp.eq.f32.partialorder %v1844_v11, 8.507059e+37 }
 0x24c   :  { %v1649_v10 = vadd.f32 %v3892_v22, %v1648_v15  ;;  %2064 = vmatmul.bf16.gmra.mxu0 %v1972_v62  ;;  %v1823_v23 = vmul.f32 %v3322_v17, %v1822_v48 }
 0x24e   :  { %v3324_v26 = vpop.eup %3323  ;;  %v3024_v27 = vmul.f32 -1.442695, %v1649_v10  ;;  %v1824_v54 = vadd.f32 %v3322_v17, %v1823_v23 }
 0x24f   :  { %v3326_v28 = vpop.eup %3325  ;;  %v3940_v40 = vadd.f32 1.0, %v3324_v26 }
 0x250   :  { %v1836_v30 = vmul.f32 %v3326_v28, %v1721_v18  ;;  %3327 = vpow2.f32 %v3024_v27  ;;  %vm1841_vm10 = vweird.f32 %v3326_v28  ;;  %v1828_v34 = vsel %vm3947_vm11, %v3322_v17, %v1824_v54 }
 0x251   :  { %3329 = vrcp.f32 %v3940_v40  ;;  %vm1842_vm14 = vmor %vm1840_vm12, %vm1841_vm10  ;;  %v1833_v55 = vsel %vm1830_vm13, %v1832_v44, %v1828_v34  ;;  %vm1855_vm1 = vweird.f32 %v3940_v40  ;;  %v1859_v2 = vand.u32 2147483647, %v3940_v40 }
 0x252   :  { %v1837_v31 = vsub.f32 1.0, %v1836_v30  ;;  %v1861_v8 = vand.u32 2147483648, %v3940_v40 }
 0x253   :  { %v1651_v35 = vpop.f32.mrf.mxu3  ;;  %vm1860_vm5 = vcmp.eq.f32.partialorder %v1859_v2, 8.507059e+37 }
 0x254   :  { %v1652_v45 = vadd.f32 %v3892_v22, %v1651_v35  ;;  %v1838_v51 = vmul.f32 %v3326_v28, %v1837_v31  ;;  %v1862_v19 = vor.u32 1.1754944e-38, %v1861_v8 }
 0x256   :  { %v3328_v46 = vpop.eup %3327  ;;  %v3025_v39 = vmul.f32 -1.442695, %v1652_v45  ;;  %v1839_v49 = vadd.f32 %v3326_v28, %v1838_v51 }
 0x257   :  { %v3330_v52 = vpop.eup %3329  ;;  %v1723_v47 = vadd.f32 1.0, %v3328_v46  ;;  %v3999_v46 = vld [vmem:[%s4215_s6] ss:$0 sm:$0xff]  ;;  %s3557_s6 = smov [#allocation10]  }
 0x258   :  { %v1851_v50 = vmul.f32 %v3330_v52, %v3940_v40  ;;  %3331 = vpow2.f32 %v3025_v39  ;;  %v1843_v37 = vsel %vm1842_vm14, %v3326_v28, %v1839_v49  ;;  %vm1856_vm0 = vweird.f32 %v3330_v52  ;;  %s2502_s25 = sshll.u32 %s3557_s6, 4  ;;  %s2503_s25 = int_to_ptr.vmem [resolvable:$true] %s2502_s25 }
 0x259   :  { %3333 = vrcp.f32 %v1723_v47  ;;  %v1848_v6 = vsel %vm1845_vm15, %v1847_v42, %v1843_v37  ;;  %v1876_v7 = vand.u32 2147483648, %v1723_v47  ;;  %v1874_v13 = vand.u32 2147483647, %v1723_v47  ;;  %vm3962_vm3 = vmor %vm1855_vm1, %vm1856_vm0 }
 0x25a   :  { %v1973_v58 = vpack.c.bf16 %v1848_v6, %v1833_v55  ;;  %v1852_v14 = vsub.f32 1.0, %v1851_v50  ;;  %vm1870_vm4 = vweird.f32 %v1723_v47 }
 0x25b   :  { %v1653_v57 = vpop.f32.mrf.mxu3  ;;  %v1877_v20 = vor.u32 1.1754944e-38, %v1876_v7  ;;  %vm1875_vm7 = vcmp.eq.f32.partialorder %v1874_v13, 8.507059e+37 }
 0x25c   :  { %v1654_v56 = vadd.f32 %v3892_v22, %v1653_v57  ;;  %2069 = vmatmul.bf16.gmra.mxu0 %v1973_v58  ;;  %v1853_v0 = vmul.f32 %v3330_v52, %v1852_v14 }
 0x25e   :  { %v3332_v53 = vpop.eup %3331  ;;  %v3026_v61 = vmul.f32 -1.442695, %v1654_v56  ;;  %v1854_v4 = vadd.f32 %v3330_v52, %v1853_v0 }
 0x25f   :  { %v3334_v1 = vpop.eup %3333  ;;  %v3955_v32 = vadd.f32 1.0, %v3332_v53 }
 0x260   :  { %v1866_v3 = vmul.f32 %v3334_v1, %v1723_v47  ;;  %3335 = vpow2.f32 %v3026_v61  ;;  %vm1871_vm2 = vweird.f32 %v3334_v1  ;;  %v1858_v33 = vsel %vm3962_vm3, %v3330_v52, %v1854_v4 }
 0x261   :  { %3337 = vrcp.f32 %v3955_v32  ;;  %vm1872_vm6 = vmor %vm1870_vm4, %vm1871_vm2  ;;  %v1863_v24 = vsel %vm1860_vm5, %v1862_v19, %v1858_v33  ;;  %vm1885_vm9 = vweird.f32 %v3955_v32  ;;  %v1889_v38 = vand.u32 2147483647, %v3955_v32 }
 0x262   :  { %v1867_v25 = vsub.f32 1.0, %v1866_v3  ;;  %v1891_v59 = vand.u32 2147483648, %v3955_v32 }
 0x263   :  { %v1656_v5 = vpop.f32.mrf.mxu3  ;;  %vm1890_vm13 = vcmp.eq.f32.partialorder %v1889_v38, 8.507059e+37 }
 0x264   :  { %v1657_v12 = vadd.f32 %v3892_v22, %v1656_v5  ;;  %v1868_v41 = vmul.f32 %v3334_v1, %v1867_v25  ;;  %v1892_v42 = vor.u32 1.1754944e-38, %v1891_v59 }
 0x266   :  { %v3336_v9 = vpop.eup %3335  ;;  %v3027_v60 = vmul.f32 -1.442695, %v1657_v12  ;;  %v1869_v17 = vadd.f32 %v3334_v1, %v1868_v41 }
 0x267   :  { %v3338_v18 = vpop.eup %3337  ;;  %v1725_v16 = vadd.f32 1.0, %v3336_v9 }
 0x268   :  { %v1881_v21 = vmul.f32 %v3338_v18, %v3955_v32  ;;  %3339 = vpow2.f32 %v3027_v60  ;;  %v1873_v43 = vsel %vm1872_vm6, %v3334_v1, %v1869_v17  ;;  %vm1886_vm8 = vweird.f32 %v3338_v18 }
 0x269   :  { %3341 = vrcp.f32 %v1725_v16  ;;  %v1878_v62 = vsel %vm1875_vm7, %v1877_v20, %v1873_v43  ;;  %v1906_v45 = vand.u32 2147483648, %v1725_v16  ;;  %v1904_v63 = vand.u32 2147483647, %v1725_v16  ;;  %vm3977_vm11 = vmor %vm1885_vm9, %vm1886_vm8 }
 0x26a   :  { %v1974_v48 = vpack.c.bf16 %v1878_v62, %v1863_v24  ;;  %v1882_v15 = vsub.f32 1.0, %v1881_v21  ;;  %vm1900_vm12 = vweird.f32 %v1725_v16 }
 0x26b   :  { %v1658_v10 = vpop.f32.mrf.mxu3  ;;  %v1907_v50 = vor.u32 1.1754944e-38, %v1906_v45  ;;  %vm1905_vm15 = vcmp.eq.f32.partialorder %v1904_v63, 8.507059e+37 }
 0x26c   :  { %v1659_v26 = vadd.f32 %v3892_v22, %v1658_v10  ;;  %2074 = vmatmul.bf16.gmra.mxu0 %v1974_v48  ;;  %v1883_v28 = vmul.f32 %v3338_v18, %v1882_v15 }
 0x26e   :  { %v3340_v27 = vpop.eup %3339  ;;  %v3028_v23 = vmul.f32 -1.442695, %v1659_v26  ;;  %v1884_v31 = vadd.f32 %v3338_v18, %v1883_v28 }
 0x26f   :  { %v3342_v40 = vpop.eup %3341  ;;  %v3970_v30 = vadd.f32 1.0, %v3340_v27 }
 0x270   :  { %v1896_v54 = vmul.f32 %v3342_v40, %v1725_v16  ;;  %3343 = vpow2.f32 %v3028_v23  ;;  %vm1901_vm10 = vweird.f32 %v3342_v40  ;;  %v1888_v49 = vsel %vm3977_vm11, %v3338_v18, %v1884_v31 }
 0x271   :  { %3345 = vrcp.f32 %v3970_v30  ;;  %vm1902_vm14 = vmor %vm1900_vm12, %vm1901_vm10  ;;  %v1893_v6 = vsel %vm1890_vm13, %v1892_v42, %v1888_v49  ;;  %vm1915_vm1 = vweird.f32 %v3970_v30  ;;  %v1921_v2 = vand.u32 2147483648, %v3970_v30 }
 0x272   :  { %v1897_v35 = vsub.f32 1.0, %v1896_v54  ;;  %v1919_v7 = vand.u32 2147483647, %v3970_v30 }
 0x273   :  { %v1661_v36 = vpop.f32.mrf.mxu3  ;;  %v1922_v17 = vor.u32 1.1754944e-38, %v1921_v2 }
 0x274   :  { %v1662_v51 = vadd.f32 %v3892_v22, %v1661_v36  ;;  %v1898_v11 = vmul.f32 %v3342_v40, %v1897_v35  ;;  %vm1920_vm6 = vcmp.eq.f32.partialorder %v1919_v7, 8.507059e+37 }
 0x276   :  { %v3344_v39 = vpop.eup %3343  ;;  %v3029_v34 = vmul.f32 -1.442695, %v1662_v51  ;;  %v1899_v52 = vadd.f32 %v3342_v40, %v1898_v11  ;;  %v2095_v11 = vlaneseq }
 0x277   :  { %v3346_v47 = vpop.eup %3345  ;;  %v1727_v44 = vadd.f32 1.0, %v3344_v39 }
 0x278   :  { %v1911_v37 = vmul.f32 %v3346_v47, %v3970_v30  ;;  %3347 = vpow2.f32 %v3029_v34  ;;  %v1903_v55 = vsel %vm1902_vm14, %v3342_v40, %v1899_v52  ;;  %vm1916_vm0 = vweird.f32 %v3346_v47 }
 0x279   :  { %3349 = vrcp.f32 %v1727_v44  ;;  %v1908_v58 = vsel %vm1905_vm15, %v1907_v50, %v1903_v55  ;;  %v1936_v8 = vand.u32 2147483648, %v1727_v44  ;;  %v1934_v12 = vand.u32 2147483647, %v1727_v44  ;;  %vm3988_vm3 = vmor %vm1915_vm1, %vm1916_vm0 }
 0x27a   :  { %v1975_v14 = vpack.c.bf16 %v1908_v58, %v1893_v6  ;;  %v1912_v57 = vsub.f32 1.0, %v1911_v37  ;;  %vm1930_vm4 = vweird.f32 %v1727_v44  ;;  %v3994_v63 = vand.u32 127, %v2095_v11 }
 0x27b   :  { %v1663_v56 = vpop.f32.mrf.mxu3  ;;  %v1937_v18 = vor.u32 1.1754944e-38, %v1936_v8  ;;  %vm1935_vm7 = vcmp.eq.f32.partialorder %v1934_v12, 8.507059e+37 }
 0x27c   :  { %v1664_v53 = vadd.f32 %v3892_v22, %v1663_v56  ;;  %2079 = vmatmul.bf16.gmra.mxu0 %v1975_v14  ;;  %v1913_v1 = vmul.f32 %v3346_v47, %v1912_v57  ;;  %vm2097_vm0 = vcmp.lt.s32.totalorder %v3994_v63, 10 }
 0x27e   :  { %v3348_v61 = vpop.eup %3347  ;;  %v3030_v0 = vmul.f32 -1.442695, %v1664_v53  ;;  %v1914_v25 = vadd.f32 %v3346_v47, %v1913_v1 }
 0x27f   :  { %v3350_v32 = vpop.eup %3349  ;;  %v1728_v3 = vadd.f32 1.0, %v3348_v61 }
 0x280   :  { %v1926_v4 = vmul.f32 %v3350_v32, %v1727_v44  ;;  %3351 = vpow2.f32 %v3030_v0  ;;  %vm1931_vm2 = vweird.f32 %v3350_v32  ;;  %v1918_v29 = vsel %vm3988_vm3, %v3346_v47, %v1914_v25 }
 0x281   :  { %3353 = vrcp.f32 %v1728_v3  ;;  %vm1932_vm5 = vmor %vm1930_vm4, %vm1931_vm2  ;;  %v1923_v20 = vsel %vm1920_vm6, %v1922_v17, %v1918_v29  ;;  %vm1945_vm9 = vweird.f32 %v1728_v3  ;;  %v1951_v27 = vand.u32 2147483648, %v1728_v3 }
 0x282   :  { %v1927_v5 = vsub.f32 1.0, %v1926_v4  ;;  %v1949_v28 = vand.u32 2147483647, %v1728_v3 }
 0x283   :  { %v1952_v35 = vor.u32 1.1754944e-38, %v1951_v27 }
 0x284   :  { %v1928_v22 = vmul.f32 %v3350_v32, %v1927_v5  ;;  %vm1950_vm14 = vcmp.eq.f32.partialorder %v1949_v28, 8.507059e+37 }
 0x286   :  { %v3352_v13 = vpop.eup %3351  ;;  %v1929_v9 = vadd.f32 %v3350_v32, %v1928_v22 }
 0x287   :  { %v3354_v60 = vpop.eup %3353  ;;  %v1729_v33 = vadd.f32 1.0, %v3352_v13 }
 0x288   :  { %v1941_v16 = vmul.f32 %v3354_v60, %v1728_v3  ;;  %v1933_v19 = vsel %vm1932_vm5, %v3350_v32, %v1929_v9  ;;  %vm1946_vm8 = vweird.f32 %v3354_v60 }
 0x289   :  { %3355 = vrcp.f32 %v1729_v33  ;;  %v1938_v21 = vsel %vm1935_vm7, %v1937_v18, %v1933_v19  ;;  %v1966_v23 = vand.u32 2147483648, %v1729_v33  ;;  %v1964_v30 = vand.u32 2147483647, %v1729_v33  ;;  %vm1947_vm11 = vmor %vm1945_vm9, %vm1946_vm8 }
 0x28a   :  { %v1976_v43 = vpack.c.bf16 %v1938_v21, %v1923_v20  ;;  %v1942_v24 = vsub.f32 1.0, %v1941_v16  ;;  %vm1960_vm12 = vweird.f32 %v1729_v33 }
 0x28b   :  { %v1967_v36 = vor.u32 1.1754944e-38, %v1966_v23  ;;  %vm1965_vm15 = vcmp.eq.f32.partialorder %v1964_v30, 8.507059e+37 }
 0x28c   :  { %2084 = vmatmul.bf16.gmra.mxu0 %v1976_v43  ;;  %v1943_v62 = vmul.f32 %v3354_v60, %v1942_v24 }
 0x28e   :  { %v1944_v10 = vadd.f32 %v3354_v60, %v1943_v62 }
 0x28f   :  { %v3356_v48 = vpop.eup %3355 }
 0x290   :  { %v1956_v15 = vmul.f32 %v3356_v48, %v1729_v33  ;;  %vm1961_vm10 = vweird.f32 %v3356_v48  ;;  %v1948_v54 = vsel %vm1947_vm11, %v3354_v60, %v1944_v10 }
 0x291   :  { %vm1962_vm13 = vmor %vm1960_vm12, %vm1961_vm10  ;;  %v1953_v59 = vsel %vm1950_vm14, %v1952_v35, %v1948_v54 }
 0x292   :  { %v1957_v26 = vsub.f32 1.0, %v1956_v15 }
 0x294   :  { %v1958_v40 = vmul.f32 %v3356_v48, %v1957_v26 }
 0x296   :  { %v1959_v31 = vadd.f32 %v3356_v48, %v1958_v40 }
 0x298   :  { %v1963_v38 = vsel %vm1962_vm13, %v3356_v48, %v1959_v31 }
 0x299   :  { %v1968_v45 = vsel %vm1965_vm15, %v1967_v36, %v1963_v38 }
 0x29a   :  { %v1977_v51 = vpack.c.bf16 %v1968_v45, %v1953_v59 }
 0x29c   :  { %2089 = vmatmul.bf16.gmra.mxu0 %v1977_v51 }
 0x2a9   :  { %v2055_v39 = vpop.f32.mrf.mxu0 }
 0x2aa   :  { %v2056_v34 = vadd.f32 %v3999_v46, %v2055_v39 }
 0x2ac   :  { %v2098_v49 = vsel %vm2097_vm0, %v2056_v34, -1e+30 }
 0x2ad   :  { %2114 = vmax.xlane.f32.xlu0 %v2098_v49 }
 0x2b1   :  { %v2057_v52 = vpop.f32.mrf.mxu0 }
 0x2b2   :  { %v2058_v47 = vadd.f32 %v3999_v46, %v2057_v52 }
 0x2b4   :  { %v4008_v44 = vsel %vm2097_vm0, %v2058_v47, -1e+30 }
 0x2b5   :  { %2116 = vmax.xlane.f32.xlu0 %v4008_v44 }
 0x2b9   :  { %v2060_v42 = vpop.f32.mrf.mxu0 }
 0x2ba   :  { %v2061_v50 = vadd.f32 %v3999_v46, %v2060_v42 }
 0x2bc   :  { %v4014_v37 = vsel %vm2097_vm0, %v2061_v50, -1e+30 }
 0x2bd   :  { %2118 = vmax.xlane.f32.xlu1 %v4014_v37 }
 0x2c1   :  { %v2062_v55 = vpop.f32.mrf.mxu0 }
 0x2c2   :  { %v2063_v6 = vadd.f32 %v3999_v46, %v2062_v55 }
 0x2c4   :  { %v4020_v58 = vsel %vm2097_vm0, %v2063_v6, -1e+30 }
 0x2c5   :  { %2120 = vmax.xlane.f32.xlu1 %v4020_v58 }
 0x2c9   :  { %v2065_v14 = vpop.f32.mrf.mxu0 }
 0x2ca   :  { %v2066_v57 = vadd.f32 %v3999_v46, %v2065_v14 }
 0x2cc   :  { %v4026_v56 = vsel %vm2097_vm0, %v2066_v57, -1e+30 }
 0x2cd   :  { %2122 = vmax.xlane.f32.xlu2 %v4026_v56 }
 0x2d1   :  { %v2067_v53 = vpop.f32.mrf.mxu0 }
 0x2d2   :  { %v2068_v61 = vadd.f32 %v3999_v46, %v2067_v53 }
 0x2d4   :  { %v4032_v0 = vsel %vm2097_vm0, %v2068_v61, -1e+30 }
 0x2d5   :  { %2124 = vmax.xlane.f32.xlu2 %v4032_v0 }
 0x2d9   :  { %v2070_v1 = vpop.f32.mrf.mxu0 }
 0x2da   :  { %v2071_v32 = vadd.f32 %v3999_v46, %v2070_v1 }
 0x2dc   :  { %v4038_v3 = vsel %vm2097_vm0, %v2071_v32, -1e+30 }
 0x2dd   :  { %2126 = vmax.xlane.f32.xlu0 %v4038_v3 }
 0x2e1   :  { %v2072_v4 = vpop.f32.mrf.mxu0 }
 0x2e2   :  { %v2073_v25 = vadd.f32 %v3999_v46, %v2072_v4 }
 0x2e4   :  { %v4044_v5 = vsel %vm2097_vm0, %v2073_v25, -1e+30 }
 0x2e5   :  { %2128 = vmax.xlane.f32.xlu1 %v4044_v5 }
 0x2e9   :  { %v2075_v2 = vpop.f32.mrf.mxu0 }
 0x2ea   :  { %v2076_v8 = vadd.f32 %v3999_v46, %v2075_v2 }
 0x2ec   :  { %v4050_v7 = vsel %vm2097_vm0, %v2076_v8, -1e+30 }
 0x2ed   :  { %2130 = vmax.xlane.f32.xlu2 %v4050_v7 }
 0x2f1   :  { %v2077_v22 = vpop.f32.mrf.mxu0 }
 0x2f2   :  { %v2078_v12 = vadd.f32 %v3999_v46, %v2077_v22 }
 0x2f4   :  { %v4056_v41 = vsel %vm2097_vm0, %v2078_v12, -1e+30 }
 0x2f5   :  { %2132 = vmax.xlane.f32.xlu0 %v4056_v41 }
 0x2f9   :  { %v2080_v13 = vpop.f32.mrf.mxu0 }
 0x2fa   :  { %v2081_v29 = vadd.f32 %v3999_v46, %v2080_v13 }
 0x2fc   :  { %v4062_v9 = vsel %vm2097_vm0, %v2081_v29, -1e+30 }
 0x2fd   :  { %2134 = vmax.xlane.f32.xlu1 %v4062_v9 }
 0x301   :  { %v2082_v60 = vpop.f32.mrf.mxu0 }
 0x302   :  { %v2083_v33 = vadd.f32 %v3999_v46, %v2082_v60 }
 0x304   :  { %v4068_v17 = vsel %vm2097_vm0, %v2083_v33, -1e+30 }
 0x305   :  { %2136 = vmax.xlane.f32.xlu2 %v4068_v17 }
 0x309   :  { %v2085_v18 = vpop.f32.mrf.mxu0 }
 0x30a   :  { %v2086_v16 = vadd.f32 %v3999_v46, %v2085_v18 }
 0x30c   :  { %v4074_v19 = vsel %vm2097_vm0, %v2086_v16, -1e+30 }
 0x30d   :  { %2138 = vmax.xlane.f32.xlu0 %v4074_v19 }
 0x311   :  { %v2087_v20 = vpop.f32.mrf.mxu0 }
 0x312   :  { %v2088_v21 = vadd.f32 %v3999_v46, %v2087_v20 }
 0x314   :  { %v4080_v43 = vsel %vm2097_vm0, %v2088_v21, -1e+30 }
 0x315   :  { %2140 = vmax.xlane.f32.xlu1 %v4080_v43 }
 0x319   :  { %v2090_v24 = vpop.f32.mrf.mxu0 }
 0x31a   :  { %v2091_v62 = vadd.f32 %v3999_v46, %v2090_v24 }
 0x31c   :  { %v4086_v48 = vsel %vm2097_vm0, %v2091_v62, -1e+30 }
 0x31d   :  { %2142 = vmax.xlane.f32.xlu2 %v4086_v48 }
 0x320   :  { %v2115_v15 = vpop.xlane.xlu0 %2114 }
 0x321   :  { %v2146_v10 = vsub.f32 %v2098_v49, %v2115_v15  ;;  %v2092_v26 = vpop.f32.mrf.mxu0 }
 0x322   :  { %v2093_v27 = vadd.f32 %v3999_v46, %v2092_v26 }
 0x323   :  { %v2162_v23 = vmul.f32 1.442695, %v2146_v10 }
 0x324   :  { %v4092_v28 = vsel %vm2097_vm0, %v2093_v27, -1e+30 }
 0x325   :  { %3357 = vpow2.f32 %v2162_v23  ;;  %2144 = vmax.xlane.f32.xlu0 %v4092_v28 }
 0x328   :  { %v2117_v40 = vpop.xlane.xlu0 %2116 }
 0x329   :  { %v2147_v30 = vsub.f32 %v4008_v44, %v2117_v40 }
 0x32b   :  { %v3358_v54 = vpop.eup %3357  ;;  %v2164_v31 = vmul.f32 1.442695, %v2147_v30 }
 0x32c   :  { %v4098_v35 = vsel %vm2097_vm0, %v3358_v54, 0.0 }
 0x32d   :  { %3359 = vpow2.f32 %v2164_v31  ;;  %2210 = vadd.xlane.f32.xlu1 %v4098_v35 }
 0x330   :  { %v2119_v36 = vpop.xlane.xlu1 %2118 }
 0x331   :  { %v2148_v38 = vsub.f32 %v4014_v37, %v2119_v36 }
 0x333   :  { %v3360_v59 = vpop.eup %3359  ;;  %v2166_v45 = vmul.f32 1.442695, %v2148_v38 }
 0x334   :  { %v4104_v51 = vsel %vm2097_vm0, %v3360_v59, 0.0 }
 0x335   :  { %3361 = vpow2.f32 %v2166_v45  ;;  %2212 = vadd.xlane.f32.xlu2 %v4104_v51 }
 0x338   :  { %v2121_v11 = vpop.xlane.xlu1 %2120 }
 0x339   :  { %v2149_v46 = vsub.f32 %v4020_v58, %v2121_v11 }
 0x33b   :  { %v3362_v39 = vpop.eup %3361  ;;  %v2168_v34 = vmul.f32 1.442695, %v2149_v46 }
 0x33c   :  { %v4110_v49 = vsel %vm2097_vm0, %v3362_v39, 0.0 }
 0x33d   :  { %3363 = vpow2.f32 %v2168_v34  ;;  %2214 = vadd.xlane.f32.xlu0 %v4110_v49 }
 0x340   :  { %v2123_v52 = vpop.xlane.xlu2 %2122 }
 0x341   :  { %v2150_v47 = vsub.f32 %v4026_v56, %v2123_v52 }
 0x343   :  { %v3364_v44 = vpop.eup %3363  ;;  %v2170_v42 = vmul.f32 1.442695, %v2150_v47 }
 0x344   :  { %v4116_v50 = vsel %vm2097_vm0, %v3364_v44, 0.0 }
 0x345   :  { %3365 = vpow2.f32 %v2170_v42  ;;  %2216 = vadd.xlane.f32.xlu1 %v4116_v50 }
 0x348   :  { %v2125_v37 = vpop.xlane.xlu2 %2124 }
 0x349   :  { %v2151_v55 = vsub.f32 %v4032_v0, %v2125_v37 }
 0x34b   :  { %v3366_v6 = vpop.eup %3365  ;;  %v2172_v58 = vmul.f32 1.442695, %v2151_v55 }
 0x34c   :  { %v4122_v14 = vsel %vm2097_vm0, %v3366_v6, 0.0 }
 0x34d   :  { %3367 = vpow2.f32 %v2172_v58  ;;  %2218 = vadd.xlane.f32.xlu2 %v4122_v14 }
 0x350   :  { %v2127_v57 = vpop.xlane.xlu0 %2126 }
 0x351   :  { %v2152_v56 = vsub.f32 %v4038_v3, %v2127_v57 }
 0x353   :  { %v3368_v53 = vpop.eup %3367  ;;  %v2174_v61 = vmul.f32 1.442695, %v2152_v56 }
 0x354   :  { %v4128_v1 = vsel %vm2097_vm0, %v3368_v53, 0.0 }
 0x355   :  { %3369 = vpow2.f32 %v2174_v61  ;;  %2220 = vadd.xlane.f32.xlu0 %v4128_v1 }
 0x358   :  { %v2129_v0 = vpop.xlane.xlu1 %2128 }
 0x359   :  { %v2153_v32 = vsub.f32 %v4044_v5, %v2129_v0 }
 0x35b   :  { %v3370_v4 = vpop.eup %3369  ;;  %v2176_v25 = vmul.f32 1.442695, %v2153_v32 }
 0x35c   :  { %v4134_v2 = vsel %vm2097_vm0, %v3370_v4, 0.0 }
 0x35d   :  { %3371 = vpow2.f32 %v2176_v25  ;;  %2222 = vadd.xlane.f32.xlu1 %v4134_v2 }
 0x360   :  { %v2131_v3 = vpop.xlane.xlu2 %2130 }
 0x361   :  { %v2154_v8 = vsub.f32 %v4050_v7, %v2131_v3 }
 0x363   :  { %v3372_v22 = vpop.eup %3371  ;;  %v2178_v12 = vmul.f32 1.442695, %v2154_v8 }
 0x364   :  { %v4140_v13 = vsel %vm2097_vm0, %v3372_v22, 0.0 }
 0x365   :  { %3373 = vpow2.f32 %v2178_v12  ;;  %2224 = vadd.xlane.f32.xlu2 %v4140_v13 }
 0x368   :  { %v2133_v5 = vpop.xlane.xlu0 %2132 }
 0x369   :  { %v2155_v29 = vsub.f32 %v4056_v41, %v2133_v5 }
 0x36b   :  { %v3374_v60 = vpop.eup %3373  ;;  %v2180_v33 = vmul.f32 1.442695, %v2155_v29 }
 0x36c   :  { %v4146_v18 = vsel %vm2097_vm0, %v3374_v60, 0.0 }
 0x36d   :  { %3375 = vpow2.f32 %v2180_v33  ;;  %2226 = vadd.xlane.f32.xlu0 %v4146_v18 }
 0x370   :  { %v2135_v7 = vpop.xlane.xlu1 %2134 }
 0x371   :  { %v2156_v16 = vsub.f32 %v4062_v9, %v2135_v7 }
 0x373   :  { %v3376_v20 = vpop.eup %3375  ;;  %v2182_v21 = vmul.f32 1.442695, %v2156_v16 }
 0x374   :  { %v4152_v24 = vsel %vm2097_vm0, %v3376_v20, 0.0 }
 0x375   :  { %3377 = vpow2.f32 %v2182_v21  ;;  %2228 = vadd.xlane.f32.xlu1 %v4152_v24 }
 0x378   :  { %v2137_v41 = vpop.xlane.xlu2 %2136 }
 0x379   :  { %v2157_v62 = vsub.f32 %v4068_v17, %v2137_v41 }
 0x37b   :  { %v3378_v15 = vpop.eup %3377  ;;  %v2184_v10 = vmul.f32 1.442695, %v2157_v62 }
 0x37c   :  { %v4158_v26 = vsel %vm2097_vm0, %v3378_v15, 0.0 }
 0x37d   :  { %3379 = vpow2.f32 %v2184_v10  ;;  %2230 = vadd.xlane.f32.xlu2 %v4158_v26 }
 0x380   :  { %v2139_v9 = vpop.xlane.xlu0 %2138 }
 0x381   :  { %v2158_v27 = vsub.f32 %v4074_v19, %v2139_v9 }
 0x383   :  { %v3380_v23 = vpop.eup %3379  ;;  %v2186_v40 = vmul.f32 1.442695, %v2158_v27 }
 0x384   :  { %v4164_v30 = vsel %vm2097_vm0, %v3380_v23, 0.0 }
 0x385   :  { %3381 = vpow2.f32 %v2186_v40  ;;  %2232 = vadd.xlane.f32.xlu0 %v4164_v30 }
 0x388   :  { %v2141_v17 = vpop.xlane.xlu1 %2140 }
 0x389   :  { %v2159_v54 = vsub.f32 %v4080_v43, %v2141_v17 }
 0x38b   :  { %v3382_v31 = vpop.eup %3381  ;;  %v2188_v36 = vmul.f32 1.442695, %v2159_v54 }
 0x38c   :  { %v4170_v38 = vsel %vm2097_vm0, %v3382_v31, 0.0 }
 0x38d   :  { %3383 = vpow2.f32 %v2188_v36  ;;  %2234 = vadd.xlane.f32.xlu1 %v4170_v38 }
 0x390   :  { %v2143_v19 = vpop.xlane.xlu2 %2142 }
 0x391   :  { %v2160_v59 = vsub.f32 %v4086_v48, %v2143_v19 }
 0x393   :  { %v3384_v45 = vpop.eup %3383  ;;  %v2190_v11 = vmul.f32 1.442695, %v2160_v59 }
 0x394   :  { %v4176_v46 = vsel %vm2097_vm0, %v3384_v45, 0.0 }
 0x395   :  { %3385 = vpow2.f32 %v2190_v11  ;;  %2236 = vadd.xlane.f32.xlu2 %v4176_v46 }
 0x398   :  { %v2145_v43 = vpop.xlane.xlu0 %2144 }
 0x399   :  { %v2161_v39 = vsub.f32 %v4092_v28, %v2145_v43 }
 0x39b   :  { %v3386_v34 = vpop.eup %3385  ;;  %v2192_v52 = vmul.f32 1.442695, %v2161_v39 }
 0x39c   :  { %v4182_v47 = vsel %vm2097_vm0, %v3386_v34, 0.0 }
 0x39d   :  { %3387 = vpow2.f32 %v2192_v52  ;;  %2238 = vadd.xlane.f32.xlu0 %v4182_v47 }
 0x3a0   :  { %v2211_v48 = vpop.xlane.xlu1 %2210 }
 0x3a1   :  { %3389 = vrcp.f32 %v2211_v48  ;;  %v2253_v58 = vand.u32 2147483648, %v2211_v48  ;;  %v2251_v56 = vand.u32 2147483647, %v2211_v48  ;;  %vm2247_vm2 = vweird.f32 %v2211_v48 }
 0x3a3   :  { %v3388_v44 = vpop.eup %3387  ;;  %v2254_v0 = vor.u32 1.1754944e-38, %v2253_v58  ;;  %vm2252_vm4 = vcmp.eq.f32.partialorder %v2251_v56, 8.507059e+37 }
 0x3a4   :  { %v4187_v42 = vsel %vm2097_vm0, %v3388_v44, 0.0 }
 0x3a5   :  { %2240 = vadd.xlane.f32.xlu1 %v4187_v42 }
 0x3a7   :  { %v3390_v37 = vpop.eup %3389 }
 0x3a8   :  { %v2243_v28 = vmul.f32 %v3390_v37, %v2211_v48  ;;  %v2213_v55 = vpop.xlane.xlu2 %2212  ;;  %vm2248_vm1 = vweird.f32 %v3390_v37 }
 0x3a9   :  { %3391 = vrcp.f32 %v2213_v55  ;;  %vm2249_vm3 = vmor %vm2247_vm2, %vm2248_vm1  ;;  %v2268_v22 = vand.u32 2147483648, %v2213_v55  ;;  %v2266_v5 = vand.u32 2147483647, %v2213_v55  ;;  %vm2262_vm6 = vweird.f32 %v2213_v55 }
 0x3aa   :  { %v2244_v6 = vsub.f32 1.0, %v2243_v28 }
 0x3ab   :  { %v2269_v33 = vor.u32 1.1754944e-38, %v2268_v22  ;;  %vm2267_vm8 = vcmp.eq.f32.partialorder %v2266_v5, 8.507059e+37 }
 0x3ac   :  { %v2245_v57 = vmul.f32 %v3390_v37, %v2244_v6 }
 0x3ae   :  { %v2246_v53 = vadd.f32 %v3390_v37, %v2245_v57 }
 0x3af   :  { %v3392_v61 = vpop.eup %3391 }
 0x3b0   :  { %v2250_v32 = vsel %vm2249_vm3, %v3390_v37, %v2246_v53  ;;  %v2258_v63 = vmul.f32 %v3392_v61, %v2213_v55  ;;  %v2215_v4 = vpop.xlane.xlu0 %2214  ;;  %vm2263_vm5 = vweird.f32 %v3392_v61 }
 0x3b1   :  { %v2255_v25 = vsel %vm2252_vm4, %v2254_v0, %v2250_v32  ;;  %3393 = vrcp.f32 %v2215_v4  ;;  %vm2264_vm7 = vmor %vm2262_vm6, %vm2263_vm5  ;;  %v2283_v62 = vand.u32 2147483648, %v2215_v4  ;;  %v2281_v10 = vand.u32 2147483647, %v2215_v4 }
 0x3b2   :  { %v2256_v3 = vmul.f32 %v2255_v25, %v4098_v35  ;;  %v2259_v8 = vsub.f32 1.0, %v2258_v63  ;;  %vm2277_vm10 = vweird.f32 %v2215_v4 }
 0x3b3   :  { %v2284_v23 = vor.u32 1.1754944e-38, %v2283_v62  ;;  %vm2282_vm12 = vcmp.eq.f32.partialorder %v2281_v10, 8.507059e+37 }
 0x3b4   :  { %2482 = vst [vmem:[#allocation10] sm:$0xff] %v2256_v3  ;;  %v2260_v12 = vmul.f32 %v3392_v61, %v2259_v8 }
 0x3b6   :  { %v2261_v29 = vadd.f32 %v3392_v61, %v2260_v12 }
 0x3b7   :  { %v3394_v60 = vpop.eup %3393 }
 0x3b8   :  { %v2265_v7 = vsel %vm2264_vm7, %v3392_v61, %v2261_v29  ;;  %v2273_v16 = vmul.f32 %v3394_v60, %v2215_v4  ;;  %v2217_v20 = vpop.xlane.xlu1 %2216  ;;  %vm2278_vm9 = vweird.f32 %v3394_v60 }
 0x3b9   :  { %v2270_v21 = vsel %vm2267_vm8, %v2269_v33, %v2265_v7  ;;  %3395 = vrcp.f32 %v2217_v20  ;;  %vm2279_vm11 = vmor %vm2277_vm10, %vm2278_vm9  ;;  %v2298_v19 = vand.u32 2147483648, %v2217_v20  ;;  %v2296_v45 = vand.u32 2147483647, %v2217_v20 }
 0x3ba   :  { %v2271_v41 = vmul.f32 %v2270_v21, %v4104_v51  ;;  %v2274_v35 = vsub.f32 1.0, %v2273_v16  ;;  %vm2292_vm14 = vweird.f32 %v2217_v20 }
 0x3bb   :  { %v2299_v39 = vor.u32 1.1754944e-38, %v2298_v19  ;;  %vm2297_vm0 = vcmp.eq.f32.partialorder %v2296_v45, 8.507059e+37 }
 0x3bc   :  { %2483 = vst [vmem:[#allocation10 + $0x8] sm:$0xff] %v2271_v41  ;;  %v2275_v15 = vmul.f32 %v3394_v60, %v2274_v35 }
 0x3be   :  { %v2276_v9 = vadd.f32 %v3394_v60, %v2275_v15 }
 0x3bf   :  { %v3396_v27 = vpop.eup %3395 }
 0x3c0   :  { %v2280_v40 = vsel %vm2279_vm11, %v3394_v60, %v2276_v9  ;;  %v2288_v17 = vmul.f32 %v3396_v27, %v2217_v20  ;;  %v2219_v54 = vpop.xlane.xlu2 %2218  ;;  %vm2293_vm13 = vweird.f32 %v3396_v27 }
 0x3c1   :  { %v2285_v31 = vsel %vm2282_vm12, %v2284_v23, %v2280_v40  ;;  %3397 = vrcp.f32 %v2219_v54  ;;  %vm2294_vm15 = vmor %vm2292_vm14, %vm2293_vm13  ;;  %v2313_v28 = vand.u32 2147483648, %v2219_v54  ;;  %v2311_v6 = vand.u32 2147483647, %v2219_v54 }
 0x3c2   :  { %v2286_v36 = vmul.f32 %v2285_v31, %v4110_v49  ;;  %v2289_v51 = vsub.f32 1.0, %v2288_v17  ;;  %vm2307_vm2 = vweird.f32 %v2219_v54 }
 0x3c3   :  { %v2314_v56 = vor.u32 1.1754944e-38, %v2313_v28  ;;  %vm2312_vm4 = vcmp.eq.f32.partialorder %v2311_v6, 8.507059e+37 }
 0x3c4   :  { %2484 = vst [vmem:[#allocation10 + $0x10] sm:$0xff] %v2286_v36  ;;  %v2290_v59 = vmul.f32 %v3396_v27, %v2289_v51 }
 0x3c6   :  { %v2291_v11 = vadd.f32 %v3396_v27, %v2290_v59 }
 0x3c7   :  { %v3398_v43 = vpop.eup %3397 }
 0x3c8   :  { %v2295_v34 = vsel %vm2294_vm15, %v3396_v27, %v2291_v11  ;;  %v2303_v52 = vmul.f32 %v3398_v43, %v2219_v54  ;;  %v2221_v48 = vpop.xlane.xlu0 %2220  ;;  %vm2308_vm1 = vweird.f32 %v3398_v43 }
 0x3c9   :  { %v2300_v44 = vsel %vm2297_vm0, %v2299_v39, %v2295_v34  ;;  %3399 = vrcp.f32 %v2221_v48  ;;  %vm2309_vm3 = vmor %vm2307_vm2, %vm2308_vm1  ;;  %v2328_v4 = vand.u32 2147483648, %v2221_v48  ;;  %v2326_v3 = vand.u32 2147483647, %v2221_v48 }
 0x3ca   :  { %v2301_v37 = vmul.f32 %v2300_v44, %v4116_v50  ;;  %v2304_v49 = vsub.f32 1.0, %v2303_v52  ;;  %vm2322_vm6 = vweird.f32 %v2221_v48 }
 0x3cb   :  { %v2329_v12 = vor.u32 1.1754944e-38, %v2328_v4  ;;  %vm2327_vm8 = vcmp.eq.f32.partialorder %v2326_v3, 8.507059e+37 }
 0x3cc   :  { %2485 = vst [vmem:[#allocation10 + $0x18] sm:$0xff] %v2301_v37  ;;  %v2305_v55 = vmul.f32 %v3398_v43, %v2304_v49 }
 0x3ce   :  { %v2306_v58 = vadd.f32 %v3398_v43, %v2305_v55 }
 0x3cf   :  { %v3400_v57 = vpop.eup %3399 }
 0x3d0   :  { %v2310_v53 = vsel %vm2309_vm3, %v3398_v43, %v2306_v58  ;;  %v2318_v61 = vmul.f32 %v3400_v57, %v2221_v48  ;;  %v2223_v0 = vpop.xlane.xlu1 %2222  ;;  %vm2323_vm5 = vweird.f32 %v3400_v57 }
 0x3d1   :  { %v2315_v32 = vsel %vm2312_vm4, %v2314_v56, %v2310_v53  ;;  %3401 = vrcp.f32 %v2223_v0  ;;  %vm2324_vm7 = vmor %vm2322_vm6, %vm2323_vm5  ;;  %v2343_v16 = vand.u32 2147483648, %v2223_v0  ;;  %v2341_v21 = vand.u32 2147483647, %v2223_v0 }
 0x3d2   :  { %v2316_v63 = vmul.f32 %v2315_v32, %v4122_v14  ;;  %v2319_v50 = vsub.f32 1.0, %v2318_v61  ;;  %vm2337_vm10 = vweird.f32 %v2223_v0 }
 0x3d3   :  { %v2344_v62 = vor.u32 1.1754944e-38, %v2343_v16  ;;  %vm2342_vm12 = vcmp.eq.f32.partialorder %v2341_v21, 8.507059e+37 }
 0x3d4   :  { %2486 = vst [vmem:[#allocation10 + $0x20] sm:$0xff] %v2316_v63  ;;  %v2320_v25 = vmul.f32 %v3400_v57, %v2319_v50 }
 0x3d6   :  { %v2321_v8 = vadd.f32 %v3400_v57, %v2320_v25 }
 0x3d7   :  { %v3402_v22 = vpop.eup %3401 }
 0x3d8   :  { %v2325_v5 = vsel %vm2324_vm7, %v3400_v57, %v2321_v8  ;;  %v2333_v29 = vmul.f32 %v3402_v22, %v2223_v0  ;;  %v2225_v60 = vpop.xlane.xlu2 %2224  ;;  %vm2338_vm9 = vweird.f32 %v3402_v22 }
 0x3d9   :  { %v2330_v33 = vsel %vm2327_vm8, %v2329_v12, %v2325_v5  ;;  %3403 = vrcp.f32 %v2225_v60  ;;  %vm2339_vm11 = vmor %vm2337_vm10, %vm2338_vm9  ;;  %v2358_v40 = vand.u32 2147483648, %v2225_v60  ;;  %v2356_v54 = vand.u32 2147483647, %v2225_v60 }
 0x3da   :  { %v2331_v7 = vmul.f32 %v2330_v33, %v4128_v1  ;;  %v2334_v14 = vsub.f32 1.0, %v2333_v29  ;;  %vm2352_vm14 = vweird.f32 %v2225_v60 }
 0x3db   :  { %v2359_v51 = vor.u32 1.1754944e-38, %v2358_v40  ;;  %vm2357_vm0 = vcmp.eq.f32.partialorder %v2356_v54, 8.507059e+37 }
 0x3dc   :  { %2487 = vst [vmem:[#allocation10 + $0x28] sm:$0xff] %v2331_v7  ;;  %v2335_v20 = vmul.f32 %v3402_v22, %v2334_v14 }
 0x3de   :  { %v2336_v41 = vadd.f32 %v3402_v22, %v2335_v20 }
 0x3df   :  { %v3404_v35 = vpop.eup %3403 }
 0x3e0   :  { %v2340_v15 = vsel %vm2339_vm11, %v3402_v22, %v2336_v41  ;;  %v2348_v10 = vmul.f32 %v3404_v35, %v2225_v60  ;;  %v2227_v9 = vpop.xlane.xlu0 %2226  ;;  %vm2353_vm13 = vweird.f32 %v3404_v35 }
 0x3e1   :  { %v2345_v27 = vsel %vm2342_vm12, %v2344_v62, %v2340_v15  ;;  %3405 = vrcp.f32 %v2227_v9  ;;  %vm2354_vm15 = vmor %vm2352_vm14, %vm2353_vm13  ;;  %v2373_v39 = vand.u32 2147483648, %v2227_v9  ;;  %v2371_v52 = vand.u32 2147483647, %v2227_v9 }
 0x3e2   :  { %v2346_v23 = vmul.f32 %v2345_v27, %v4134_v2  ;;  %v2349_v1 = vsub.f32 1.0, %v2348_v10  ;;  %vm2367_vm2 = vweird.f32 %v2227_v9 }
 0x3e3   :  { %v2374_v37 = vor.u32 1.1754944e-38, %v2373_v39  ;;  %vm2372_vm4 = vcmp.eq.f32.partialorder %v2371_v52, 8.507059e+37 }
 0x3e4   :  { %2488 = vst [vmem:[#allocation10 + $0x30] sm:$0xff] %v2346_v23  ;;  %v2350_v17 = vmul.f32 %v3404_v35, %v2349_v1 }
 0x3e6   :  { %v2351_v31 = vadd.f32 %v3404_v35, %v2350_v17 }
 0x3e7   :  { %v3406_v36 = vpop.eup %3405 }
 0x3e8   :  { %v2355_v19 = vsel %vm2354_vm15, %v3404_v35, %v2351_v31  ;;  %v2363_v59 = vmul.f32 %v3406_v36, %v2227_v9  ;;  %v2229_v45 = vpop.xlane.xlu1 %2228  ;;  %vm2368_vm1 = vweird.f32 %v3406_v36 }
 0x3e9   :  { %v2360_v11 = vsel %vm2357_vm0, %v2359_v51, %v2355_v19  ;;  %3407 = vrcp.f32 %v2229_v45  ;;  %vm2369_vm3 = vmor %vm2367_vm2, %vm2368_vm1  ;;  %v2388_v57 = vand.u32 2147483648, %v2229_v45  ;;  %v2386_v53 = vand.u32 2147483647, %v2229_v45 }
 0x3ea   :  { %v2361_v43 = vmul.f32 %v2360_v11, %v4140_v13  ;;  %v2364_v2 = vsub.f32 1.0, %v2363_v59  ;;  %vm2382_vm6 = vweird.f32 %v2229_v45 }
 0x3eb   :  { %v2389_v32 = vor.u32 1.1754944e-38, %v2388_v57  ;;  %vm2387_vm8 = vcmp.eq.f32.partialorder %v2386_v53, 8.507059e+37 }
 0x3ec   :  { %2489 = vst [vmem:[#allocation10 + $0x38] sm:$0xff] %v2361_v43  ;;  %v2365_v34 = vmul.f32 %v3406_v36, %v2364_v2 }
 0x3ee   :  { %v2366_v48 = vadd.f32 %v3406_v36, %v2365_v34 }
 0x3ef   :  { %v3408_v44 = vpop.eup %3407 }
 0x3f0   :  { %v2370_v49 = vsel %vm2369_vm3, %v3406_v36, %v2366_v48  ;;  %v2378_v28 = vmul.f32 %v3408_v44, %v2229_v45  ;;  %v2231_v55 = vpop.xlane.xlu2 %2230  ;;  %vm2383_vm5 = vweird.f32 %v3408_v44 }
 0x3f1   :  { %v2375_v6 = vsel %vm2372_vm4, %v2374_v37, %v2370_v49  ;;  %3409 = vrcp.f32 %v2231_v55  ;;  %vm2384_vm7 = vmor %vm2382_vm6, %vm2383_vm5  ;;  %v2403_v8 = vand.u32 2147483648, %v2231_v55  ;;  %v2401_v12 = vand.u32 2147483647, %v2231_v55 }
 0x3f2   :  { %v2376_v58 = vmul.f32 %v2375_v6, %v4146_v18  ;;  %v2379_v13 = vsub.f32 1.0, %v2378_v28  ;;  %vm2397_vm10 = vweird.f32 %v2231_v55 }
 0x3f3   :  { %v2404_v60 = vor.u32 1.1754944e-38, %v2403_v8  ;;  %vm2402_vm12 = vcmp.eq.f32.partialorder %v2401_v12, 8.507059e+37 }
 0x3f4   :  { %2490 = vst [vmem:[#allocation10 + $0x40] sm:$0xff] %v2376_v58  ;;  %v2380_v56 = vmul.f32 %v3408_v44, %v2379_v13 }
 0x3f6   :  { %v2381_v61 = vadd.f32 %v3408_v44, %v2380_v56 }
 0x3f7   :  { %v3410_v0 = vpop.eup %3409 }
 0x3f8   :  { %v2385_v63 = vsel %vm2384_vm7, %v3408_v44, %v2381_v61  ;;  %v2393_v50 = vmul.f32 %v3410_v0, %v2231_v55  ;;  %v2233_v4 = vpop.xlane.xlu0 %2232  ;;  %vm2398_vm9 = vweird.f32 %v3410_v0 }
 0x3f9   :  { %v2390_v25 = vsel %vm2387_vm8, %v2389_v32, %v2385_v63  ;;  %3411 = vrcp.f32 %v2233_v4  ;;  %vm2399_vm11 = vmor %vm2397_vm10, %vm2398_vm9  ;;  %v2418_v21 = vand.u32 2147483648, %v2233_v4  ;;  %v2416_v35 = vand.u32 2147483647, %v2233_v4 }
 0x3fa   :  { %v2391_v3 = vmul.f32 %v2390_v25, %v4152_v24  ;;  %v2394_v18 = vsub.f32 1.0, %v2393_v50  ;;  %vm2412_vm14 = vweird.f32 %v2233_v4 }
 0x3fb   :  { %v2419_v10 = vor.u32 1.1754944e-38, %v2418_v21  ;;  %vm2417_vm0 = vcmp.eq.f32.partialorder %v2416_v35, 8.507059e+37 }
 0x3fc   :  { %2491 = vst [vmem:[#allocation10 + $0x48] sm:$0xff] %v2391_v3  ;;  %v2395_v22 = vmul.f32 %v3410_v0, %v2394_v18 }
 0x3fe   :  { %v2396_v5 = vadd.f32 %v3410_v0, %v2395_v22 }
 0x3ff   :  { %v3412_v29 = vpop.eup %3411 }
 0x400   :  { %v2400_v33 = vsel %vm2399_vm11, %v3410_v0, %v2396_v5  ;;  %v2408_v7 = vmul.f32 %v3412_v29, %v2233_v4  ;;  %v2235_v14 = vpop.xlane.xlu1 %2234  ;;  %vm2413_vm13 = vweird.f32 %v3412_v29 }
 0x401   :  { %v2405_v16 = vsel %vm2402_vm12, %v2404_v60, %v2400_v33  ;;  %3413 = vrcp.f32 %v2235_v14  ;;  %vm2414_vm15 = vmor %vm2412_vm14, %vm2413_vm13  ;;  %v2433_v17 = vand.u32 2147483648, %v2235_v14  ;;  %v2431_v31 = vand.u32 2147483647, %v2235_v14 }
 0x402   :  { %v2406_v20 = vmul.f32 %v2405_v16, %v4158_v26  ;;  %v2409_v24 = vsub.f32 1.0, %v2408_v7  ;;  %vm2427_vm2 = vweird.f32 %v2235_v14 }
 0x403   :  { %v2434_v19 = vor.u32 1.1754944e-38, %v2433_v17  ;;  %vm2432_vm4 = vcmp.eq.f32.partialorder %v2431_v31, 8.507059e+37 }
 0x404   :  { %2492 = vst [vmem:[#allocation10 + $0x50] sm:$0xff] %v2406_v20  ;;  %v2410_v41 = vmul.f32 %v3412_v29, %v2409_v24 }
 0x406   :  { %v2411_v62 = vadd.f32 %v3412_v29, %v2410_v41 }
 0x407   :  { %v3414_v15 = vpop.eup %3413 }
 0x408   :  { %v2415_v9 = vsel %vm2414_vm15, %v3412_v29, %v2411_v62  ;;  %v2423_v27 = vmul.f32 %v3414_v15, %v2235_v14  ;;  %v2237_v23 = vpop.xlane.xlu2 %2236  ;;  %vm2428_vm1 = vweird.f32 %v3414_v15 }
 0x409   :  { %v2420_v1 = vsel %vm2417_vm0, %v2419_v10, %v2415_v9  ;;  %3415 = vrcp.f32 %v2237_v23  ;;  %vm2429_vm3 = vmor %vm2427_vm2, %vm2428_vm1  ;;  %v2448_v39 = vand.u32 2147483648, %v2237_v23  ;;  %v2446_v52 = vand.u32 2147483647, %v2237_v23 }
 0x40a   :  { %v2421_v40 = vmul.f32 %v2420_v1, %v4164_v30  ;;  %v2424_v26 = vsub.f32 1.0, %v2423_v27  ;;  %vm2442_vm6 = vweird.f32 %v2237_v23 }
 0x40b   :  { %v2449_v37 = vor.u32 1.1754944e-38, %v2448_v39  ;;  %vm2447_vm8 = vcmp.eq.f32.partialorder %v2446_v52, 8.507059e+37 }
 0x40c   :  { %2493 = vst [vmem:[#allocation10 + $0x58] sm:$0xff] %v2421_v40  ;;  %v2425_v54 = vmul.f32 %v3414_v15, %v2424_v26 }
 0x40e   :  { %v2426_v36 = vadd.f32 %v3414_v15, %v2425_v54 }
 0x40f   :  { %v3416_v51 = vpop.eup %3415 }
 0x410   :  { %v2430_v59 = vsel %vm2429_vm3, %v3414_v15, %v2426_v36  ;;  %v2438_v45 = vmul.f32 %v3416_v51, %v2237_v23  ;;  %v2239_v11 = vpop.xlane.xlu0 %2238  ;;  %vm2443_vm5 = vweird.f32 %v3416_v51 }
 0x411   :  { %v2435_v43 = vsel %vm2432_vm4, %v2434_v19, %v2430_v59  ;;  %3417 = vrcp.f32 %v2239_v11  ;;  %vm2444_vm7 = vmor %vm2442_vm6, %vm2443_vm5  ;;  %v2463_v13 = vand.u32 2147483648, %v2239_v11  ;;  %v2461_v56 = vand.u32 2147483647, %v2239_v11 }
 0x412   :  { %v2436_v2 = vmul.f32 %v2435_v43, %v4170_v38  ;;  %v2439_v30 = vsub.f32 1.0, %v2438_v45  ;;  %vm2457_vm10 = vweird.f32 %v2239_v11 }
 0x413   :  { %v2464_v0 = vor.u32 1.1754944e-38, %v2463_v13  ;;  %vm2462_vm12 = vcmp.eq.f32.partialorder %v2461_v56, 8.507059e+37 }
 0x414   :  { %2494 = vst [vmem:[#allocation10 + $0x60] sm:$0xff] %v2436_v2  ;;  %v2440_v34 = vmul.f32 %v3416_v51, %v2439_v30 }
 0x416   :  { %v2441_v48 = vadd.f32 %v3416_v51, %v2440_v34 }
 0x417   :  { %v3418_v44 = vpop.eup %3417 }
 0x418   :  { %v2445_v49 = vsel %vm2444_vm7, %v3416_v51, %v2441_v48  ;;  %v2453_v28 = vmul.f32 %v3418_v44, %v2239_v11  ;;  %v2241_v55 = vpop.xlane.xlu1 %2240  ;;  %vm2458_vm9 = vweird.f32 %v3418_v44 }
 0x419   :  { %v2450_v6 = vsel %vm2447_vm8, %v2449_v37, %v2445_v49  ;;  %3419 = vrcp.f32 %v2241_v55  ;;  %vm2459_vm11 = vmor %vm2457_vm10, %vm2458_vm9  ;;  %v2478_v3 = vand.u32 2147483648, %v2241_v55  ;;  %v2476_v18 = vand.u32 2147483647, %v2241_v55 }
 0x41a   :  { %v2451_v58 = vmul.f32 %v2450_v6, %v4176_v46  ;;  %v2454_v38 = vsub.f32 1.0, %v2453_v28  ;;  %vm2472_vm14 = vweird.f32 %v2241_v55 }
 0x41b   :  { %v2479_v22 = vor.u32 1.1754944e-38, %v2478_v3  ;;  %vm2477_vm0 = vcmp.eq.f32.partialorder %v2476_v18, 8.507059e+37 }
 0x41c   :  { %2495 = vst [vmem:[#allocation10 + $0x68] sm:$0xff] %v2451_v58  ;;  %v2455_v57 = vmul.f32 %v3418_v44, %v2454_v38 }
 0x41e   :  { %v2456_v53 = vadd.f32 %v3418_v44, %v2455_v57 }
 0x41f   :  { %v3420_v61 = vpop.eup %3419 }
 0x420   :  { %v2460_v32 = vsel %vm2459_vm11, %v3418_v44, %v2456_v53  ;;  %v2468_v63 = vmul.f32 %v3420_v61, %v2241_v55  ;;  %vm2473_vm13 = vweird.f32 %v3420_v61 }
 0x421   :  { %v2465_v50 = vsel %vm2462_vm12, %v2464_v0, %v2460_v32  ;;  %vm2474_vm15 = vmor %vm2472_vm14, %vm2473_vm13 }
 0x422   :  { %v2466_v4 = vmul.f32 %v2465_v50, %v4182_v47  ;;  %v2469_v25 = vsub.f32 1.0, %v2468_v63 }
 0x424   :  { %2496 = vst [vmem:[#allocation10 + $0x70] sm:$0xff] %v2466_v4  ;;  %v2470_v46 = vmul.f32 %v3420_v61, %v2469_v25 }
 0x426   :  { %v2471_v8 = vadd.f32 %v3420_v61, %v2470_v46 }
 0x428   :  { %v2475_v12 = vsel %vm2474_vm15, %v3420_v61, %v2471_v8 }
 0x429   :  { %v2480_v5 = vsel %vm2477_vm0, %v2479_v22, %v2475_v12 }
 0x42a   :  { %v2481_v47 = vmul.f32 %v2480_v5, %v4187_v42 }
 0x42c   :  { %2497 = vst [vmem:[#allocation10 + $0x78] sm:$0xff] %v2481_v47 }
 0x42d   :  { %2510 = dma.vmem_to_hbm [thread:$0]  %s2503_s25, 2048, %s2505_s28, [#allocation4], %s3558_s29, %s3558_s29, %s3559_s30  }
 0x42e   :  { %3547 = dma.done.wait [#allocation4], 2048  }
 0x42f   :  { %3548 = vsyncadd [#allocation4], 4294965248 }
 0x430   :  { %2515 = vsyncpa [#allocation3], 1 }
 0x431   :  { %2516 = vsyncpa [#allocation6], 1 }
 0x432   :  { %2517 = vsyncpa [#allocation9], 1 }
 0x433   :  { %2518 = vsyncpa [#allocation4], 1 }

</bundles_post_ra>
